<compile_context>
chip_gen: v6e
topology: v6e:2x2x1
jax: 0.10.0
libtpu: 0.0.40
codegen_flags: <defaults>
</compile_context>

<pallas_src>
import functools
import math

import jax
import jax.numpy as jnp
from jax.experimental import pallas as pl
from jax.experimental.pallas import tpu as pltpu

# ------------------------------ synthetic config ------------------------------
VOCAB = 100
PAD_ID = 0
TYPE_VOCAB = 2
HIDDEN = 32
N_LAYERS = 2
N_HEADS = 4
HEAD_DIM = HIDDEN // N_HEADS
INTERMEDIATE = 64
MAX_POS = 64
LN_EPS = 1e-12

NUM_LABELS = 3
DROPOUT_PROB = 0.1          # eval-mode no-op

BATCH = 2
SEQ = 8


# ------------------------------- fused Pallas kernel ---------------------------
def _fused_forward_kernel(
    x_ref, bias_ref, lab_ref, embln_ref,
    wqkv_ref, bqkv_ref, wao_ref, bao_ref, ln1_ref,
    wi_ref, bi_ref, wo_ref, bo_ref, ln2_ref,
    poolw_ref, poolb_ref, clsw_ref, clsb_ref,
    logits_ref, loss_ref,
    *, n_layers, n_heads, head_dim, batch, seq, eps,
):
    """Whole KnowBERT-style forward fused in VMEM: emb-LN -> L encoder layers ->
    pooler -> (eval-mode dropout no-op) -> classifier -> mean cross-entropy."""
    H = n_heads * head_dim

    def layer_norm(v, g, b):
        mu = jnp.mean(v, axis=-1, keepdims=True)
        vc = v - mu
        var = jnp.mean(vc * vc, axis=-1, keepdims=True)
        return vc * jax.lax.rsqrt(var + eps) * g + b

    # ----- embedding LayerNorm -----
    embln = embln_ref[...]                                   # (2, H): [gamma; beta]
    x = layer_norm(x_ref[...], embln[0:1], embln[1:2])       # (B*S, H) f32

    bias = bias_ref[...]                                     # (B*S, B*S) additive mask
    scale = 1.0 / math.sqrt(head_dim)

    # ----- encoder layers (weights stacked over leading layer axis) -----
    for l in range(n_layers):
        xb = x.astype(jnp.bfloat16)

        # fused QKV projection: one (B*S,H) x (H,3H) bf16 matmul, f32 accumulation
        qkv = jnp.dot(xb, wqkv_ref[l], preferred_element_type=jnp.float32) + bqkv_ref[l]
        qkvb = qkv.astype(jnp.bfloat16)

        # head-major views (heads, B*S, dh) for batched-head attention
        q_st = jnp.stack(
            [qkvb[:, h * head_dim:(h + 1) * head_dim] for h in range(n_heads)], axis=0)
        k_st = jnp.stack(
            [qkvb[:, H + h * head_dim:H + (h + 1) * head_dim] for h in range(n_heads)], axis=0)
        v_st = jnp.stack(
            [qkvb[:, 2 * H + h * head_dim:2 * H + (h + 1) * head_dim] for h in range(n_heads)],
            axis=0)

        # scores over the flattened token axis; block-diagonal bias keeps examples apart
        s = jnp.einsum('hqd,hkd->hqk', q_st, k_st,
                       preferred_element_type=jnp.float32)            # (heads, BS, BS)
        s = s * scale + bias[None]

        m = jnp.max(s, axis=-1, keepdims=True)
        p = jnp.exp(s - m)
        p = p * pl.reciprocal(jnp.sum(p, axis=-1, keepdims=True), approx=True)

        ctx = jnp.einsum('hqk,hkd->hqd', p.astype(jnp.bfloat16), v_st,
                         preferred_element_type=jnp.float32)          # (heads, BS, dh)
        ctx2 = jnp.concatenate([ctx[h] for h in range(n_heads)],
                               axis=-1).astype(jnp.bfloat16)          # (BS, H)

        attn = jnp.dot(ctx2, wao_ref[l], preferred_element_type=jnp.float32) + bao_ref[l]

        # residual + LayerNorm 1
        ln1 = ln1_ref[l]                                              # (2, H)
        h1 = layer_norm(attn + x, ln1[0:1], ln1[1:2])

        # FFN (bf16 matmuls, f32 accumulation)
        inter = jnp.dot(h1.astype(jnp.bfloat16), wi_ref[l],
                        preferred_element_type=jnp.float32) + bi_ref[l]
        # TODO(synk): HF BERT 'gelu' is erf-based; tanh approximation used in-kernel.
        c = math.sqrt(2.0 / math.pi)
        inter = 0.5 * inter * (1.0 + jnp.tanh(c * (inter + 0.044715 * inter * inter * inter)))
        ffn = jnp.dot(inter.astype(jnp.bfloat16), wo_ref[l],
                      preferred_element_type=jnp.float32) + bo_ref[l]

        # residual + LayerNorm 2
        ln2 = ln2_ref[l]
        x = layer_norm(ffn + h1, ln2[0:1], ln2[1:2])

    # ----- pooler on [CLS] rows + dropout(no-op) + classifier -----
    cls_rows = jnp.concatenate([x[b * seq:b * seq + 1, :] for b in range(batch)], axis=0)
    pooled = jnp.tanh(jnp.dot(cls_rows.astype(jnp.bfloat16), poolw_ref[...],
                              preferred_element_type=jnp.float32) + poolb_ref[...])
    # TODO(synk): nn.Dropout(dropout_prob) is an eval-mode no-op here.
    logits = jnp.dot(pooled.astype(jnp.bfloat16), clsw_ref[...],
                     preferred_element_type=jnp.float32) + clsb_ref[...]   # (B, L)
    logits_ref[...] = logits

    # ----- mean cross-entropy over the batch -----
    mm = jnp.max(logits, axis=-1, keepdims=True)
    z = logits - mm
    lse = jnp.log(jnp.sum(jnp.exp(z), axis=-1, keepdims=True))
    logp = z - lse                                                        # (B, L)
    onehot = jax.lax.broadcasted_iota(jnp.int32, logp.shape, 1) == lab_ref[...]
    nll = -jnp.sum(jnp.where(onehot, logp, 0.0), axis=-1, keepdims=True)  # (B, 1)
    loss_ref[...] = jnp.sum(nll, axis=0, keepdims=True) / nll.shape[0]    # (1, 1)


def _fused_call(x, bias, labels, kb, cls_w, cls_b, batch, seq):
    ins = [x, bias, labels, kb["emb_ln"],
           kb["w_qkv"], kb["b_qkv"], kb["w_ao"], kb["b_ao"], kb["ln1"],
           kb["w_i"], kb["b_i"], kb["w_o"], kb["b_o"], kb["ln2"],
           kb["pool_w"], kb["pool_b"], cls_w, cls_b]

    def full(a):
        return pl.BlockSpec(a.shape, lambda i, _nd=a.ndim: (0,) * _nd)

    kern = functools.partial(
        _fused_forward_kernel,
        n_layers=N_LAYERS, n_heads=N_HEADS, head_dim=HEAD_DIM,
        batch=batch, seq=seq, eps=LN_EPS)

    return pl.pallas_call(
        kern,
        grid=(1,),
        in_specs=[full(a) for a in ins],
        out_specs=(
            pl.BlockSpec((batch, NUM_LABELS), lambda i: (0, 0)),
            pl.BlockSpec((1, 1), lambda i: (0, 0)),
        ),
        out_shape=(
            jax.ShapeDtypeStruct((batch, NUM_LABELS), jnp.float32),
            jax.ShapeDtypeStruct((1, 1), jnp.float32),
        ),
        compiler_params=pltpu.CompilerParams(dimension_semantics=("arbitrary",)),
    )(*ins)


# --------------------------------- forward pass ---------------------------------
def knowbert_forward(params, tokens, segment_ids, candidates=None, label_ids=None):
    # TODO(synk): `candidates` (KnowBert entity-candidate spans) have no Pallas
    #             equivalent here; accepted for signature parity, unused.
    del candidates
    kb = params["knowbert"]
    B, S = tokens.shape

    # embeddings (gathers stay in plain JAX); LayerNorm is fused into the kernel
    positions = jnp.arange(S, dtype=jnp.int32)[None, :]
    emb = (kb["word_emb"][tokens]
           + kb["pos_emb"][positions]
           + kb["type_emb"][segment_ids])
    x = emb.reshape(B * S, HIDDEN)

    # block-diagonal additive attention bias over the flattened (B*S) token axis:
    # 0 for non-pad keys in the same example, -10000 (standard BERT mask) otherwise.
    key_ok = (tokens != PAD_ID).reshape(B * S)
    ex = jnp.arange(B * S, dtype=jnp.int32) // S
    same_ex = ex[:, None] == ex[None, :]
    bias = jnp.where(same_ex & key_ok[None, :], 0.0, -10000.0).astype(jnp.float32)

    have_labels = label_ids is not None
    labels = label_ids if have_labels else jnp.zeros((B,), jnp.int32)
    labels = labels.reshape(B, 1).astype(jnp.int32)

    logits, loss2d = _fused_call(x, bias, labels, kb,
                                 params["cls_w"], params["cls_b"], B, S)
    loss = loss2d[0, 0] if have_labels else None
    return loss, logits


# -------------------------------- parameter init --------------------------------
def init_params(key):
    keys = iter(jax.random.split(key, 128))

    def nrm(shape):
        return jax.random.normal(next(keys), shape, jnp.float32) * 0.02

    def stack_layers(shape):
        return jnp.stack([nrm(shape) for _ in range(N_LAYERS)], axis=0)

    ln_pair = jnp.concatenate(
        [jnp.ones((1, HIDDEN), jnp.float32), jnp.zeros((1, HIDDEN), jnp.float32)], axis=0)

    kb = {
        "word_emb": nrm((VOCAB, HIDDEN)),
        "pos_emb": nrm((MAX_POS, HIDDEN)),
        "type_emb": nrm((TYPE_VOCAB, HIDDEN)),
        "emb_ln": ln_pair,                                              # (2, H)
        "w_qkv": stack_layers((HIDDEN, 3 * HIDDEN)).astype(jnp.bfloat16),
        "b_qkv": jnp.zeros((N_LAYERS, 1, 3 * HIDDEN), jnp.float32),
        "w_ao": stack_layers((HIDDEN, HIDDEN)).astype(jnp.bfloat16),
        "b_ao": jnp.zeros((N_LAYERS, 1, HIDDEN), jnp.float32),
        "ln1": jnp.tile(ln_pair[None], (N_LAYERS, 1, 1)),               # (L, 2, H)
        "w_i": stack_layers((HIDDEN, INTERMEDIATE)).astype(jnp.bfloat16),
        "b_i": jnp.zeros((N_LAYERS, 1, INTERMEDIATE), jnp.float32),
        "w_o": stack_layers((INTERMEDIATE, HIDDEN)).astype(jnp.bfloat16),
        "b_o": jnp.zeros((N_LAYERS, 1, HIDDEN), jnp.float32),
        "ln2": jnp.tile(ln_pair[None], (N_LAYERS, 1, 1)),
        "pool_w": nrm((HIDDEN, HIDDEN)).astype(jnp.bfloat16),
        "pool_b": jnp.zeros((1, HIDDEN), jnp.float32),
    }
    return {
        "knowbert": kb,
        "cls_w": nrm((HIDDEN, NUM_LABELS)).astype(jnp.bfloat16),
        "cls_b": jnp.zeros((1, NUM_LABELS), jnp.float32),
    }


# -------------------------------------- main -------------------------------------
if __name__ == "__main__":
    key = jax.random.PRNGKey(0)
    pkey, tkey, lkey = jax.random.split(key, 3)
    params = init_params(pkey)

    tokens = jax.random.randint(tkey, (BATCH, SEQ), 3, VOCAB, dtype=jnp.int32)
    segment_ids = jnp.zeros((BATCH, SEQ), jnp.int32)
    candidates = jnp.zeros((BATCH, 2, 5), jnp.int32)     # placeholder candidate spans
    label_ids = jax.random.randint(lkey, (BATCH,), 0, NUM_LABELS, dtype=jnp.int32)

    fwd = jax.jit(functools.partial(knowbert_forward, params))
    loss, logits = fwd(tokens, segment_ids, candidates, label_ids)
    jax.block_until_ready((loss, logits))

    assert logits.shape == (BATCH, NUM_LABELS)
    assert logits.dtype == jnp.float32
    assert bool(jnp.all(jnp.isfinite(logits)))
    assert bool(jnp.isfinite(loss))
    print("KERNEL_OK")
</pallas_src>

<mosaic_0001>
module attributes {stable_mosaic.version = 11 : i64} {
  func.func @_fused_forward_kernel(%arg0: i32, %arg1: memref<16x32xf32, #tpu.memory_space<vmem>>, %arg2: memref<16x16xf32, #tpu.memory_space<vmem>>, %arg3: memref<2x1xi32, #tpu.memory_space<vmem>>, %arg4: memref<2x32xf32, #tpu.memory_space<vmem>>, %arg5: memref<2x32x96xbf16, #tpu.memory_space<vmem>>, %arg6: memref<2x1x96xf32, #tpu.memory_space<vmem>>, %arg7: memref<2x32x32xbf16, #tpu.memory_space<vmem>>, %arg8: memref<2x1x32xf32, #tpu.memory_space<vmem>>, %arg9: memref<2x2x32xf32, #tpu.memory_space<vmem>>, %arg10: memref<2x32x64xbf16, #tpu.memory_space<vmem>>, %arg11: memref<2x1x64xf32, #tpu.memory_space<vmem>>, %arg12: memref<2x64x32xbf16, #tpu.memory_space<vmem>>, %arg13: memref<2x1x32xf32, #tpu.memory_space<vmem>>, %arg14: memref<2x2x32xf32, #tpu.memory_space<vmem>>, %arg15: memref<32x32xbf16, #tpu.memory_space<vmem>>, %arg16: memref<1x32xf32, #tpu.memory_space<vmem>>, %arg17: memref<32x3xbf16, #tpu.memory_space<vmem>>, %arg18: memref<1x3xf32, #tpu.memory_space<vmem>>, %arg19: memref<2x3xf32, #tpu.memory_space<vmem>>, %arg20: memref<1x1xf32, #tpu.memory_space<vmem>>) attributes {dimension_semantics = [#tpu.dimension_semantics<arbitrary>], iteration_bounds = array<i64: 1>, scalar_prefetch = 0 : i64, scratch_operands = 0 : i64, tpu.core_type = #tpu.core_type<tc>, window_params = [{pipeline_mode = #tpu.pipeline_mode<synchronous>, transform_indices = @transform_0, window_bounds = array<i64: 16, 32>}, {pipeline_mode = #tpu.pipeline_mode<synchronous>, transform_indices = @transform_1, window_bounds = array<i64: 16, 16>}, {pipeline_mode = #tpu.pipeline_mode<synchronous>, transform_indices = @transform_2, window_bounds = array<i64: 2, 1>}, {pipeline_mode = #tpu.pipeline_mode<synchronous>, transform_indices = @transform_3, window_bounds = array<i64: 2, 32>}, {pipeline_mode = #tpu.pipeline_mode<synchronous>, transform_indices = @transform_4, window_bounds = array<i64: 2, 32, 96>}, {pipeline_mode = #tpu.pipeline_mode<synchronous>, transform_indices = @transform_5, window_bounds = array<i64: 2, 1, 96>}, {pipeline_mode = #tpu.pipeline_mode<synchronous>, transform_indices = @transform_6, window_bounds = array<i64: 2, 32, 32>}, {pipeline_mode = #tpu.pipeline_mode<synchronous>, transform_indices = @transform_7, window_bounds = array<i64: 2, 1, 32>}, {pipeline_mode = #tpu.pipeline_mode<synchronous>, transform_indices = @transform_8, window_bounds = array<i64: 2, 2, 32>}, {pipeline_mode = #tpu.pipeline_mode<synchronous>, transform_indices = @transform_9, window_bounds = array<i64: 2, 32, 64>}, {pipeline_mode = #tpu.pipeline_mode<synchronous>, transform_indices = @transform_10, window_bounds = array<i64: 2, 1, 64>}, {pipeline_mode = #tpu.pipeline_mode<synchronous>, transform_indices = @transform_11, window_bounds = array<i64: 2, 64, 32>}, {pipeline_mode = #tpu.pipeline_mode<synchronous>, transform_indices = @transform_12, window_bounds = array<i64: 2, 1, 32>}, {pipeline_mode = #tpu.pipeline_mode<synchronous>, transform_indices = @transform_13, window_bounds = array<i64: 2, 2, 32>}, {pipeline_mode = #tpu.pipeline_mode<synchronous>, transform_indices = @transform_14, window_bounds = array<i64: 32, 32>}, {pipeline_mode = #tpu.pipeline_mode<synchronous>, transform_indices = @transform_15, window_bounds = array<i64: 1, 32>}, {pipeline_mode = #tpu.pipeline_mode<synchronous>, transform_indices = @transform_16, window_bounds = array<i64: 32, 3>}, {pipeline_mode = #tpu.pipeline_mode<synchronous>, transform_indices = @transform_17, window_bounds = array<i64: 1, 3>}, {pipeline_mode = #tpu.pipeline_mode<synchronous>, transform_indices = @transform_18, window_bounds = array<i64: 2, 3>}, {pipeline_mode = #tpu.pipeline_mode<synchronous>, transform_indices = @transform_19, window_bounds = array<i64: 1, 1>}]} {
    %c0 = arith.constant 0 : index
    %c0_0 = arith.constant 0 : index
    %0 = vector.load %arg4[%c0, %c0_0] : memref<2x32xf32, #tpu.memory_space<vmem>>, vector<2x32xf32>
    %c0_1 = arith.constant 0 : index
    %c0_2 = arith.constant 0 : index
    %1 = vector.load %arg1[%c0_1, %c0_2] : memref<16x32xf32, #tpu.memory_space<vmem>>, vector<16x32xf32>
    %2 = vector.extract_strided_slice %0 {offsets = [0, 0], sizes = [1, 32], strides = [1, 1]} : vector<2x32xf32> to vector<1x32xf32>
    %3 = vector.extract_strided_slice %0 {offsets = [1, 0], sizes = [1, 32], strides = [1, 1]} : vector<2x32xf32> to vector<1x32xf32>
    %cst = arith.constant dense<0.000000e+00> : vector<16xf32>
    %4 = vector.multi_reduction <add>, %1, %cst [1] : vector<16x32xf32> to vector<16xf32>
    %5 = vector.shape_cast %4 : vector<16xf32> to vector<16x1xf32>
    %cst_3 = arith.constant 3.200000e+01 : f32
    %6 = vector.broadcast %cst_3 : f32 to vector<16x1xf32>
    %7 = arith.divf %5, %6 : vector<16x1xf32>
    %8 = vector.broadcast %7 : vector<16x1xf32> to vector<16x32xf32>
    %9 = arith.subf %1, %8 : vector<16x32xf32>
    %10 = arith.mulf %9, %9 : vector<16x32xf32>
    %cst_4 = arith.constant dense<0.000000e+00> : vector<16xf32>
    %11 = vector.multi_reduction <add>, %10, %cst_4 [1] : vector<16x32xf32> to vector<16xf32>
    %12 = vector.shape_cast %11 : vector<16xf32> to vector<16x1xf32>
    %cst_5 = arith.constant 3.200000e+01 : f32
    %13 = vector.broadcast %cst_5 : f32 to vector<16x1xf32>
    %14 = arith.divf %12, %13 : vector<16x1xf32>
    %cst_6 = arith.constant 9.99999996E-13 : f32
    %15 = vector.broadcast %cst_6 : f32 to vector<16x1xf32>
    %16 = arith.addf %14, %15 : vector<16x1xf32>
    %17 = math.rsqrt %16 : vector<16x1xf32>
    %18 = vector.broadcast %17 : vector<16x1xf32> to vector<16x32xf32>
    %19 = arith.mulf %9, %18 : vector<16x32xf32>
    %20 = vector.broadcast %2 : vector<1x32xf32> to vector<16x32xf32>
    %21 = arith.mulf %19, %20 : vector<16x32xf32>
    %22 = vector.broadcast %3 : vector<1x32xf32> to vector<16x32xf32>
    %23 = arith.addf %21, %22 : vector<16x32xf32>
    %c0_7 = arith.constant 0 : index
    %c0_8 = arith.constant 0 : index
    %24 = vector.load %arg2[%c0_7, %c0_8] : memref<16x16xf32, #tpu.memory_space<vmem>>, vector<16x16xf32>
    %25 = arith.truncf %23 : vector<16x32xf32> to vector<16x32xbf16>
    %c0_9 = arith.constant 0 : index
    %c0_10 = arith.constant 0 : index
    %c0_11 = arith.constant 0 : index
    %26 = vector.load %arg5[%c0_9, %c0_10, %c0_11] : memref<2x32x96xbf16, #tpu.memory_space<vmem>>, vector<1x32x96xbf16>
    %27 = vector.shape_cast %26 : vector<1x32x96xbf16> to vector<32x96xbf16>
    %cst_12 = arith.constant dense<0.000000e+00> : vector<16x96xf32>
    %28 = tpu.matmul %25, %27, %cst_12 {dimension_numbers = #tpu.dot_dimension_numbers<[1], [0], [0], [1], [0, 0, 1, 1], [], []>} : vector<16x32xbf16>, vector<32x96xbf16>, vector<16x96xf32> -> vector<16x96xf32>
    %c0_13 = arith.constant 0 : index
    %c0_14 = arith.constant 0 : index
    %c0_15 = arith.constant 0 : index
    %29 = vector.load %arg6[%c0_13, %c0_14, %c0_15] : memref<2x1x96xf32, #tpu.memory_space<vmem>>, vector<1x1x96xf32>
    %30 = vector.shape_cast %29 : vector<1x1x96xf32> to vector<1x96xf32>
    %31 = vector.broadcast %30 : vector<1x96xf32> to vector<16x96xf32>
    %32 = arith.addf %28, %31 : vector<16x96xf32>
    %33 = arith.truncf %32 : vector<16x96xf32> to vector<16x96xbf16>
    %34 = vector.extract_strided_slice %33 {offsets = [0, 0], sizes = [16, 8], strides = [1, 1]} : vector<16x96xbf16> to vector<16x8xbf16>
    %35 = vector.extract_strided_slice %33 {offsets = [0, 8], sizes = [16, 8], strides = [1, 1]} : vector<16x96xbf16> to vector<16x8xbf16>
    %36 = vector.extract_strided_slice %33 {offsets = [0, 16], sizes = [16, 8], strides = [1, 1]} : vector<16x96xbf16> to vector<16x8xbf16>
    %37 = vector.extract_strided_slice %33 {offsets = [0, 24], sizes = [16, 8], strides = [1, 1]} : vector<16x96xbf16> to vector<16x8xbf16>
    %38 = vector.shape_cast %34 : vector<16x8xbf16> to vector<1x16x8xbf16>
    %39 = vector.shape_cast %35 : vector<16x8xbf16> to vector<1x16x8xbf16>
    %40 = vector.shape_cast %36 : vector<16x8xbf16> to vector<1x16x8xbf16>
    %41 = vector.shape_cast %37 : vector<16x8xbf16> to vector<1x16x8xbf16>
    %42 = tpu.concatenate %38, %39, %40, %41 in 0 : vector<1x16x8xbf16>, vector<1x16x8xbf16>, vector<1x16x8xbf16>, vector<1x16x8xbf16> -> vector<4x16x8xbf16>
    %43 = vector.extract_strided_slice %33 {offsets = [0, 32], sizes = [16, 8], strides = [1, 1]} : vector<16x96xbf16> to vector<16x8xbf16>
    %44 = vector.extract_strided_slice %33 {offsets = [0, 40], sizes = [16, 8], strides = [1, 1]} : vector<16x96xbf16> to vector<16x8xbf16>
    %45 = vector.extract_strided_slice %33 {offsets = [0, 48], sizes = [16, 8], strides = [1, 1]} : vector<16x96xbf16> to vector<16x8xbf16>
    %46 = vector.extract_strided_slice %33 {offsets = [0, 56], sizes = [16, 8], strides = [1, 1]} : vector<16x96xbf16> to vector<16x8xbf16>
    %47 = vector.shape_cast %43 : vector<16x8xbf16> to vector<1x16x8xbf16>
    %48 = vector.shape_cast %44 : vector<16x8xbf16> to vector<1x16x8xbf16>
    %49 = vector.shape_cast %45 : vector<16x8xbf16> to vector<1x16x8xbf16>
    %50 = vector.shape_cast %46 : vector<16x8xbf16> to vector<1x16x8xbf16>
    %51 = tpu.concatenate %47, %48, %49, %50 in 0 : vector<1x16x8xbf16>, vector<1x16x8xbf16>, vector<1x16x8xbf16>, vector<1x16x8xbf16> -> vector<4x16x8xbf16>
    %52 = vector.extract_strided_slice %33 {offsets = [0, 64], sizes = [16, 8], strides = [1, 1]} : vector<16x96xbf16> to vector<16x8xbf16>
    %53 = vector.extract_strided_slice %33 {offsets = [0, 72], sizes = [16, 8], strides = [1, 1]} : vector<16x96xbf16> to vector<16x8xbf16>
    %54 = vector.extract_strided_slice %33 {offsets = [0, 80], sizes = [16, 8], strides = [1, 1]} : vector<16x96xbf16> to vector<16x8xbf16>
    %55 = vector.extract_strided_slice %33 {offsets = [0, 88], sizes = [16, 8], strides = [1, 1]} : vector<16x96xbf16> to vector<16x8xbf16>
    %56 = vector.shape_cast %52 : vector<16x8xbf16> to vector<1x16x8xbf16>
    %57 = vector.shape_cast %53 : vector<16x8xbf16> to vector<1x16x8xbf16>
    %58 = vector.shape_cast %54 : vector<16x8xbf16> to vector<1x16x8xbf16>
    %59 = vector.shape_cast %55 : vector<16x8xbf16> to vector<1x16x8xbf16>
    %60 = tpu.concatenate %56, %57, %58, %59 in 0 : vector<1x16x8xbf16>, vector<1x16x8xbf16>, vector<1x16x8xbf16>, vector<1x16x8xbf16> -> vector<4x16x8xbf16>
    "tpu.trace_start"() <{level = 10 : i32, message = "hqd,hkd->hqk"}> : () -> ()
    %cst_16 = arith.constant dense<0.000000e+00> : vector<4x16x16xf32>
    %61 = tpu.matmul %42, %51, %cst_16 {dimension_numbers = #tpu.dot_dimension_numbers<[2], [2], [1], [1], [0, 0, 0, 1, 1, 1], [0], [0]>} : vector<4x16x8xbf16>, vector<4x16x8xbf16>, vector<4x16x16xf32> -> vector<4x16x16xf32>
    "tpu.trace_stop"() : () -> ()
    %cst_17 = arith.constant 0.353553385 : f32
    %62 = vector.broadcast %cst_17 : f32 to vector<4x16x16xf32>
    %63 = arith.mulf %61, %62 : vector<4x16x16xf32>
    %64 = vector.shape_cast %24 : vector<16x16xf32> to vector<1x16x16xf32>
    %65 = vector.broadcast %64 : vector<1x16x16xf32> to vector<4x16x16xf32>
    %66 = arith.addf %63, %65 : vector<4x16x16xf32>
    %cst_18 = arith.constant dense<0xFF800000> : vector<4x16xf32>
    %67 = vector.multi_reduction <maximumf>, %66, %cst_18 [2] : vector<4x16x16xf32> to vector<4x16xf32>
    %68 = vector.shape_cast %67 : vector<4x16xf32> to vector<4x16x1xf32>
    %69 = vector.broadcast %68 : vector<4x16x1xf32> to vector<4x16x16xf32>
    %70 = arith.subf %66, %69 : vector<4x16x16xf32>
    %71 = math.exp %70 : vector<4x16x16xf32>
    %cst_19 = arith.constant dense<0.000000e+00> : vector<4x16xf32>
    %72 = vector.multi_reduction <add>, %71, %cst_19 [2] : vector<4x16x16xf32> to vector<4x16xf32>
    %73 = vector.shape_cast %72 : vector<4x16xf32> to vector<4x16x1xf32>
    %74 = tpu.reciprocal %73 {approx = true} : vector<4x16x1xf32> -> vector<4x16x1xf32>
    %75 = vector.broadcast %74 : vector<4x16x1xf32> to vector<4x16x16xf32>
    %76 = arith.mulf %71, %75 : vector<4x16x16xf32>
    %77 = arith.truncf %76 : vector<4x16x16xf32> to vector<4x16x16xbf16>
    "tpu.trace_start"() <{level = 10 : i32, message = "hqk,hkd->hqd"}> : () -> ()
    %cst_20 = arith.constant dense<0.000000e+00> : vector<4x16x8xf32>
    %78 = tpu.matmul %77, %60, %cst_20 {dimension_numbers = #tpu.dot_dimension_numbers<[2], [1], [1], [2], [0, 0, 0, 1, 1, 2], [0], [0]>} : vector<4x16x16xbf16>, vector<4x16x8xbf16>, vector<4x16x8xf32> -> vector<4x16x8xf32>
    "tpu.trace_stop"() : () -> ()
    %79 = vector.extract_strided_slice %78 {offsets = [0, 0, 0], sizes = [1, 16, 8], strides = [1, 1, 1]} : vector<4x16x8xf32> to vector<1x16x8xf32>
    %80 = vector.shape_cast %79 : vector<1x16x8xf32> to vector<16x8xf32>
    %81 = vector.extract_strided_slice %78 {offsets = [1, 0, 0], sizes = [1, 16, 8], strides = [1, 1, 1]} : vector<4x16x8xf32> to vector<1x16x8xf32>
    %82 = vector.shape_cast %81 : vector<1x16x8xf32> to vector<16x8xf32>
    %83 = vector.extract_strided_slice %78 {offsets = [2, 0, 0], sizes = [1, 16, 8], strides = [1, 1, 1]} : vector<4x16x8xf32> to vector<1x16x8xf32>
    %84 = vector.shape_cast %83 : vector<1x16x8xf32> to vector<16x8xf32>
    %85 = vector.extract_strided_slice %78 {offsets = [3, 0, 0], sizes = [1, 16, 8], strides = [1, 1, 1]} : vector<4x16x8xf32> to vector<1x16x8xf32>
    %86 = vector.shape_cast %85 : vector<1x16x8xf32> to vector<16x8xf32>
    %87 = tpu.concatenate %80, %82, %84, %86 in 1 : vector<16x8xf32>, vector<16x8xf32>, vector<16x8xf32>, vector<16x8xf32> -> vector<16x32xf32>
    %88 = arith.truncf %87 : vector<16x32xf32> to vector<16x32xbf16>
    %c0_21 = arith.constant 0 : index
    %c0_22 = arith.constant 0 : index
    %c0_23 = arith.constant 0 : index
    %89 = vector.load %arg7[%c0_21, %c0_22, %c0_23] : memref<2x32x32xbf16, #tpu.memory_space<vmem>>, vector<1x32x32xbf16>
    %90 = vector.shape_cast %89 : vector<1x32x32xbf16> to vector<32x32xbf16>
    %cst_24 = arith.constant dense<0.000000e+00> : vector<16x32xf32>
    %91 = tpu.matmul %88, %90, %cst_24 {dimension_numbers = #tpu.dot_dimension_numbers<[1], [0], [0], [1], [0, 0, 1, 1], [], []>} : vector<16x32xbf16>, vector<32x32xbf16>, vector<16x32xf32> -> vector<16x32xf32>
    %c0_25 = arith.constant 0 : index
    %c0_26 = arith.constant 0 : index
    %c0_27 = arith.constant 0 : index
    %92 = vector.load %arg8[%c0_25, %c0_26, %c0_27] : memref<2x1x32xf32, #tpu.memory_space<vmem>>, vector<1x1x32xf32>
    %93 = vector.shape_cast %92 : vector<1x1x32xf32> to vector<1x32xf32>
    %94 = vector.broadcast %93 : vector<1x32xf32> to vector<16x32xf32>
    %95 = arith.addf %91, %94 : vector<16x32xf32>
    %c0_28 = arith.constant 0 : index
    %c0_29 = arith.constant 0 : index
    %c0_30 = arith.constant 0 : index
    %96 = vector.load %arg9[%c0_28, %c0_29, %c0_30] : memref<2x2x32xf32, #tpu.memory_space<vmem>>, vector<1x2x32xf32>
    %97 = vector.shape_cast %96 : vector<1x2x32xf32> to vector<2x32xf32>
    %98 = arith.addf %95, %23 : vector<16x32xf32>
    %99 = vector.extract_strided_slice %97 {offsets = [0, 0], sizes = [1, 32], strides = [1, 1]} : vector<2x32xf32> to vector<1x32xf32>
    %100 = vector.extract_strided_slice %97 {offsets = [1, 0], sizes = [1, 32], strides = [1, 1]} : vector<2x32xf32> to vector<1x32xf32>
    %cst_31 = arith.constant dense<0.000000e+00> : vector<16xf32>
    %101 = vector.multi_reduction <add>, %98, %cst_31 [1] : vector<16x32xf32> to vector<16xf32>
    %102 = vector.shape_cast %101 : vector<16xf32> to vector<16x1xf32>
    %cst_32 = arith.constant 3.200000e+01 : f32
    %103 = vector.broadcast %cst_32 : f32 to vector<16x1xf32>
    %104 = arith.divf %102, %103 : vector<16x1xf32>
    %105 = vector.broadcast %104 : vector<16x1xf32> to vector<16x32xf32>
    %106 = arith.subf %98, %105 : vector<16x32xf32>
    %107 = arith.mulf %106, %106 : vector<16x32xf32>
    %cst_33 = arith.constant dense<0.000000e+00> : vector<16xf32>
    %108 = vector.multi_reduction <add>, %107, %cst_33 [1] : vector<16x32xf32> to vector<16xf32>
    %109 = vector.shape_cast %108 : vector<16xf32> to vector<16x1xf32>
    %cst_34 = arith.constant 3.200000e+01 : f32
    %110 = vector.broadcast %cst_34 : f32 to vector<16x1xf32>
    %111 = arith.divf %109, %110 : vector<16x1xf32>
    %cst_35 = arith.constant 9.99999996E-13 : f32
    %112 = vector.broadcast %cst_35 : f32 to vector<16x1xf32>
    %113 = arith.addf %111, %112 : vector<16x1xf32>
    %114 = math.rsqrt %113 : vector<16x1xf32>
    %115 = vector.broadcast %114 : vector<16x1xf32> to vector<16x32xf32>
    %116 = arith.mulf %106, %115 : vector<16x32xf32>
    %117 = vector.broadcast %99 : vector<1x32xf32> to vector<16x32xf32>
    %118 = arith.mulf %116, %117 : vector<16x32xf32>
    %119 = vector.broadcast %100 : vector<1x32xf32> to vector<16x32xf32>
    %120 = arith.addf %118, %119 : vector<16x32xf32>
    %121 = arith.truncf %120 : vector<16x32xf32> to vector<16x32xbf16>
    %c0_36 = arith.constant 0 : index
    %c0_37 = arith.constant 0 : index
    %c0_38 = arith.constant 0 : index
    %122 = vector.load %arg10[%c0_36, %c0_37, %c0_38] : memref<2x32x64xbf16, #tpu.memory_space<vmem>>, vector<1x32x64xbf16>
    %123 = vector.shape_cast %122 : vector<1x32x64xbf16> to vector<32x64xbf16>
    %cst_39 = arith.constant dense<0.000000e+00> : vector<16x64xf32>
    %124 = tpu.matmul %121, %123, %cst_39 {dimension_numbers = #tpu.dot_dimension_numbers<[1], [0], [0], [1], [0, 0, 1, 1], [], []>} : vector<16x32xbf16>, vector<32x64xbf16>, vector<16x64xf32> -> vector<16x64xf32>
    %c0_40 = arith.constant 0 : index
    %c0_41 = arith.constant 0 : index
    %c0_42 = arith.constant 0 : index
    %125 = vector.load %arg11[%c0_40, %c0_41, %c0_42] : memref<2x1x64xf32, #tpu.memory_space<vmem>>, vector<1x1x64xf32>
    %126 = vector.shape_cast %125 : vector<1x1x64xf32> to vector<1x64xf32>
    %127 = vector.broadcast %126 : vector<1x64xf32> to vector<16x64xf32>
    %128 = arith.addf %124, %127 : vector<16x64xf32>
    %cst_43 = arith.constant 5.000000e-01 : f32
    %129 = vector.broadcast %cst_43 : f32 to vector<16x64xf32>
    %130 = arith.mulf %129, %128 : vector<16x64xf32>
    %cst_44 = arith.constant 4.471500e-02 : f32
    %131 = vector.broadcast %cst_44 : f32 to vector<16x64xf32>
    %132 = arith.mulf %131, %128 : vector<16x64xf32>
    %133 = arith.mulf %132, %128 : vector<16x64xf32>
    %134 = arith.mulf %133, %128 : vector<16x64xf32>
    %135 = arith.addf %128, %134 : vector<16x64xf32>
    %cst_45 = arith.constant 0.797884583 : f32
    %136 = vector.broadcast %cst_45 : f32 to vector<16x64xf32>
    %137 = arith.mulf %136, %135 : vector<16x64xf32>
    %138 = math.tanh %137 : vector<16x64xf32>
    %cst_46 = arith.constant 1.000000e+00 : f32
    %139 = vector.broadcast %cst_46 : f32 to vector<16x64xf32>
    %140 = arith.addf %139, %138 : vector<16x64xf32>
    %141 = arith.mulf %130, %140 : vector<16x64xf32>
    %142 = arith.truncf %141 : vector<16x64xf32> to vector<16x64xbf16>
    %c0_47 = arith.constant 0 : index
    %c0_48 = arith.constant 0 : index
    %c0_49 = arith.constant 0 : index
    %143 = vector.load %arg12[%c0_47, %c0_48, %c0_49] : memref<2x64x32xbf16, #tpu.memory_space<vmem>>, vector<1x64x32xbf16>
    %144 = vector.shape_cast %143 : vector<1x64x32xbf16> to vector<64x32xbf16>
    %cst_50 = arith.constant dense<0.000000e+00> : vector<16x32xf32>
    %145 = tpu.matmul %142, %144, %cst_50 {dimension_numbers = #tpu.dot_dimension_numbers<[1], [0], [0], [1], [0, 0, 1, 1], [], []>} : vector<16x64xbf16>, vector<64x32xbf16>, vector<16x32xf32> -> vector<16x32xf32>
    %c0_51 = arith.constant 0 : index
    %c0_52 = arith.constant 0 : index
    %c0_53 = arith.constant 0 : index
    %146 = vector.load %arg13[%c0_51, %c0_52, %c0_53] : memref<2x1x32xf32, #tpu.memory_space<vmem>>, vector<1x1x32xf32>
    %147 = vector.shape_cast %146 : vector<1x1x32xf32> to vector<1x32xf32>
    %148 = vector.broadcast %147 : vector<1x32xf32> to vector<16x32xf32>
    %149 = arith.addf %145, %148 : vector<16x32xf32>
    %c0_54 = arith.constant 0 : index
    %c0_55 = arith.constant 0 : index
    %c0_56 = arith.constant 0 : index
    %150 = vector.load %arg14[%c0_54, %c0_55, %c0_56] : memref<2x2x32xf32, #tpu.memory_space<vmem>>, vector<1x2x32xf32>
    %151 = vector.shape_cast %150 : vector<1x2x32xf32> to vector<2x32xf32>
    %152 = arith.addf %149, %120 : vector<16x32xf32>
    %153 = vector.extract_strided_slice %151 {offsets = [0, 0], sizes = [1, 32], strides = [1, 1]} : vector<2x32xf32> to vector<1x32xf32>
    %154 = vector.extract_strided_slice %151 {offsets = [1, 0], sizes = [1, 32], strides = [1, 1]} : vector<2x32xf32> to vector<1x32xf32>
    %cst_57 = arith.constant dense<0.000000e+00> : vector<16xf32>
    %155 = vector.multi_reduction <add>, %152, %cst_57 [1] : vector<16x32xf32> to vector<16xf32>
    %156 = vector.shape_cast %155 : vector<16xf32> to vector<16x1xf32>
    %cst_58 = arith.constant 3.200000e+01 : f32
    %157 = vector.broadcast %cst_58 : f32 to vector<16x1xf32>
    %158 = arith.divf %156, %157 : vector<16x1xf32>
    %159 = vector.broadcast %158 : vector<16x1xf32> to vector<16x32xf32>
    %160 = arith.subf %152, %159 : vector<16x32xf32>
    %161 = arith.mulf %160, %160 : vector<16x32xf32>
    %cst_59 = arith.constant dense<0.000000e+00> : vector<16xf32>
    %162 = vector.multi_reduction <add>, %161, %cst_59 [1] : vector<16x32xf32> to vector<16xf32>
    %163 = vector.shape_cast %162 : vector<16xf32> to vector<16x1xf32>
    %cst_60 = arith.constant 3.200000e+01 : f32
    %164 = vector.broadcast %cst_60 : f32 to vector<16x1xf32>
    %165 = arith.divf %163, %164 : vector<16x1xf32>
    %cst_61 = arith.constant 9.99999996E-13 : f32
    %166 = vector.broadcast %cst_61 : f32 to vector<16x1xf32>
    %167 = arith.addf %165, %166 : vector<16x1xf32>
    %168 = math.rsqrt %167 : vector<16x1xf32>
    %169 = vector.broadcast %168 : vector<16x1xf32> to vector<16x32xf32>
    %170 = arith.mulf %160, %169 : vector<16x32xf32>
    %171 = vector.broadcast %153 : vector<1x32xf32> to vector<16x32xf32>
    %172 = arith.mulf %170, %171 : vector<16x32xf32>
    %173 = vector.broadcast %154 : vector<1x32xf32> to vector<16x32xf32>
    %174 = arith.addf %172, %173 : vector<16x32xf32>
    %175 = arith.truncf %174 : vector<16x32xf32> to vector<16x32xbf16>
    %c1 = arith.constant 1 : index
    %c0_62 = arith.constant 0 : index
    %c0_63 = arith.constant 0 : index
    %176 = vector.load %arg5[%c1, %c0_62, %c0_63] : memref<2x32x96xbf16, #tpu.memory_space<vmem>>, vector<1x32x96xbf16>
    %177 = vector.shape_cast %176 : vector<1x32x96xbf16> to vector<32x96xbf16>
    %cst_64 = arith.constant dense<0.000000e+00> : vector<16x96xf32>
    %178 = tpu.matmul %175, %177, %cst_64 {dimension_numbers = #tpu.dot_dimension_numbers<[1], [0], [0], [1], [0, 0, 1, 1], [], []>} : vector<16x32xbf16>, vector<32x96xbf16>, vector<16x96xf32> -> vector<16x96xf32>
    %c1_65 = arith.constant 1 : index
    %c0_66 = arith.constant 0 : index
    %c0_67 = arith.constant 0 : index
    %179 = vector.load %arg6[%c1_65, %c0_66, %c0_67] : memref<2x1x96xf32, #tpu.memory_space<vmem>>, vector<1x1x96xf32>
    %180 = vector.shape_cast %179 : vector<1x1x96xf32> to vector<1x96xf32>
    %181 = vector.broadcast %180 : vector<1x96xf32> to vector<16x96xf32>
    %182 = arith.addf %178, %181 : vector<16x96xf32>
    %183 = arith.truncf %182 : vector<16x96xf32> to vector<16x96xbf16>
    %184 = vector.extract_strided_slice %183 {offsets = [0, 0], sizes = [16, 8], strides = [1, 1]} : vector<16x96xbf16> to vector<16x8xbf16>
    %185 = vector.extract_strided_slice %183 {offsets = [0, 8], sizes = [16, 8], strides = [1, 1]} : vector<16x96xbf16> to vector<16x8xbf16>
    %186 = vector.extract_strided_slice %183 {offsets = [0, 16], sizes = [16, 8], strides = [1, 1]} : vector<16x96xbf16> to vector<16x8xbf16>
    %187 = vector.extract_strided_slice %183 {offsets = [0, 24], sizes = [16, 8], strides = [1, 1]} : vector<16x96xbf16> to vector<16x8xbf16>
    %188 = vector.shape_cast %184 : vector<16x8xbf16> to vector<1x16x8xbf16>
    %189 = vector.shape_cast %185 : vector<16x8xbf16> to vector<1x16x8xbf16>
    %190 = vector.shape_cast %186 : vector<16x8xbf16> to vector<1x16x8xbf16>
    %191 = vector.shape_cast %187 : vector<16x8xbf16> to vector<1x16x8xbf16>
    %192 = tpu.concatenate %188, %189, %190, %191 in 0 : vector<1x16x8xbf16>, vector<1x16x8xbf16>, vector<1x16x8xbf16>, vector<1x16x8xbf16> -> vector<4x16x8xbf16>
    %193 = vector.extract_strided_slice %183 {offsets = [0, 32], sizes = [16, 8], strides = [1, 1]} : vector<16x96xbf16> to vector<16x8xbf16>
    %194 = vector.extract_strided_slice %183 {offsets = [0, 40], sizes = [16, 8], strides = [1, 1]} : vector<16x96xbf16> to vector<16x8xbf16>
    %195 = vector.extract_strided_slice %183 {offsets = [0, 48], sizes = [16, 8], strides = [1, 1]} : vector<16x96xbf16> to vector<16x8xbf16>
    %196 = vector.extract_strided_slice %183 {offsets = [0, 56], sizes = [16, 8], strides = [1, 1]} : vector<16x96xbf16> to vector<16x8xbf16>
    %197 = vector.shape_cast %193 : vector<16x8xbf16> to vector<1x16x8xbf16>
    %198 = vector.shape_cast %194 : vector<16x8xbf16> to vector<1x16x8xbf16>
    %199 = vector.shape_cast %195 : vector<16x8xbf16> to vector<1x16x8xbf16>
    %200 = vector.shape_cast %196 : vector<16x8xbf16> to vector<1x16x8xbf16>
    %201 = tpu.concatenate %197, %198, %199, %200 in 0 : vector<1x16x8xbf16>, vector<1x16x8xbf16>, vector<1x16x8xbf16>, vector<1x16x8xbf16> -> vector<4x16x8xbf16>
    %202 = vector.extract_strided_slice %183 {offsets = [0, 64], sizes = [16, 8], strides = [1, 1]} : vector<16x96xbf16> to vector<16x8xbf16>
    %203 = vector.extract_strided_slice %183 {offsets = [0, 72], sizes = [16, 8], strides = [1, 1]} : vector<16x96xbf16> to vector<16x8xbf16>
    %204 = vector.extract_strided_slice %183 {offsets = [0, 80], sizes = [16, 8], strides = [1, 1]} : vector<16x96xbf16> to vector<16x8xbf16>
    %205 = vector.extract_strided_slice %183 {offsets = [0, 88], sizes = [16, 8], strides = [1, 1]} : vector<16x96xbf16> to vector<16x8xbf16>
    %206 = vector.shape_cast %202 : vector<16x8xbf16> to vector<1x16x8xbf16>
    %207 = vector.shape_cast %203 : vector<16x8xbf16> to vector<1x16x8xbf16>
    %208 = vector.shape_cast %204 : vector<16x8xbf16> to vector<1x16x8xbf16>
    %209 = vector.shape_cast %205 : vector<16x8xbf16> to vector<1x16x8xbf16>
    %210 = tpu.concatenate %206, %207, %208, %209 in 0 : vector<1x16x8xbf16>, vector<1x16x8xbf16>, vector<1x16x8xbf16>, vector<1x16x8xbf16> -> vector<4x16x8xbf16>
    "tpu.trace_start"() <{level = 10 : i32, message = "hqd,hkd->hqk"}> : () -> ()
    %cst_68 = arith.constant dense<0.000000e+00> : vector<4x16x16xf32>
    %211 = tpu.matmul %192, %201, %cst_68 {dimension_numbers = #tpu.dot_dimension_numbers<[2], [2], [1], [1], [0, 0, 0, 1, 1, 1], [0], [0]>} : vector<4x16x8xbf16>, vector<4x16x8xbf16>, vector<4x16x16xf32> -> vector<4x16x16xf32>
    "tpu.trace_stop"() : () -> ()
    %cst_69 = arith.constant 0.353553385 : f32
    %212 = vector.broadcast %cst_69 : f32 to vector<4x16x16xf32>
    %213 = arith.mulf %211, %212 : vector<4x16x16xf32>
    %214 = vector.shape_cast %24 : vector<16x16xf32> to vector<1x16x16xf32>
    %215 = vector.broadcast %214 : vector<1x16x16xf32> to vector<4x16x16xf32>
    %216 = arith.addf %213, %215 : vector<4x16x16xf32>
    %cst_70 = arith.constant dense<0xFF800000> : vector<4x16xf32>
    %217 = vector.multi_reduction <maximumf>, %216, %cst_70 [2] : vector<4x16x16xf32> to vector<4x16xf32>
    %218 = vector.shape_cast %217 : vector<4x16xf32> to vector<4x16x1xf32>
    %219 = vector.broadcast %218 : vector<4x16x1xf32> to vector<4x16x16xf32>
    %220 = arith.subf %216, %219 : vector<4x16x16xf32>
    %221 = math.exp %220 : vector<4x16x16xf32>
    %cst_71 = arith.constant dense<0.000000e+00> : vector<4x16xf32>
    %222 = vector.multi_reduction <add>, %221, %cst_71 [2] : vector<4x16x16xf32> to vector<4x16xf32>
    %223 = vector.shape_cast %222 : vector<4x16xf32> to vector<4x16x1xf32>
    %224 = tpu.reciprocal %223 {approx = true} : vector<4x16x1xf32> -> vector<4x16x1xf32>
    %225 = vector.broadcast %224 : vector<4x16x1xf32> to vector<4x16x16xf32>
    %226 = arith.mulf %221, %225 : vector<4x16x16xf32>
    %227 = arith.truncf %226 : vector<4x16x16xf32> to vector<4x16x16xbf16>
    "tpu.trace_start"() <{level = 10 : i32, message = "hqk,hkd->hqd"}> : () -> ()
    %cst_72 = arith.constant dense<0.000000e+00> : vector<4x16x8xf32>
    %228 = tpu.matmul %227, %210, %cst_72 {dimension_numbers = #tpu.dot_dimension_numbers<[2], [1], [1], [2], [0, 0, 0, 1, 1, 2], [0], [0]>} : vector<4x16x16xbf16>, vector<4x16x8xbf16>, vector<4x16x8xf32> -> vector<4x16x8xf32>
    "tpu.trace_stop"() : () -> ()
    %229 = vector.extract_strided_slice %228 {offsets = [0, 0, 0], sizes = [1, 16, 8], strides = [1, 1, 1]} : vector<4x16x8xf32> to vector<1x16x8xf32>
    %230 = vector.shape_cast %229 : vector<1x16x8xf32> to vector<16x8xf32>
    %231 = vector.extract_strided_slice %228 {offsets = [1, 0, 0], sizes = [1, 16, 8], strides = [1, 1, 1]} : vector<4x16x8xf32> to vector<1x16x8xf32>
    %232 = vector.shape_cast %231 : vector<1x16x8xf32> to vector<16x8xf32>
    %233 = vector.extract_strided_slice %228 {offsets = [2, 0, 0], sizes = [1, 16, 8], strides = [1, 1, 1]} : vector<4x16x8xf32> to vector<1x16x8xf32>
    %234 = vector.shape_cast %233 : vector<1x16x8xf32> to vector<16x8xf32>
    %235 = vector.extract_strided_slice %228 {offsets = [3, 0, 0], sizes = [1, 16, 8], strides = [1, 1, 1]} : vector<4x16x8xf32> to vector<1x16x8xf32>
    %236 = vector.shape_cast %235 : vector<1x16x8xf32> to vector<16x8xf32>
    %237 = tpu.concatenate %230, %232, %234, %236 in 1 : vector<16x8xf32>, vector<16x8xf32>, vector<16x8xf32>, vector<16x8xf32> -> vector<16x32xf32>
    %238 = arith.truncf %237 : vector<16x32xf32> to vector<16x32xbf16>
    %c1_73 = arith.constant 1 : index
    %c0_74 = arith.constant 0 : index
    %c0_75 = arith.constant 0 : index
    %239 = vector.load %arg7[%c1_73, %c0_74, %c0_75] : memref<2x32x32xbf16, #tpu.memory_space<vmem>>, vector<1x32x32xbf16>
    %240 = vector.shape_cast %239 : vector<1x32x32xbf16> to vector<32x32xbf16>
    %cst_76 = arith.constant dense<0.000000e+00> : vector<16x32xf32>
    %241 = tpu.matmul %238, %240, %cst_76 {dimension_numbers = #tpu.dot_dimension_numbers<[1], [0], [0], [1], [0, 0, 1, 1], [], []>} : vector<16x32xbf16>, vector<32x32xbf16>, vector<16x32xf32> -> vector<16x32xf32>
    %c1_77 = arith.constant 1 : index
    %c0_78 = arith.constant 0 : index
    %c0_79 = arith.constant 0 : index
    %242 = vector.load %arg8[%c1_77, %c0_78, %c0_79] : memref<2x1x32xf32, #tpu.memory_space<vmem>>, vector<1x1x32xf32>
    %243 = vector.shape_cast %242 : vector<1x1x32xf32> to vector<1x32xf32>
    %244 = vector.broadcast %243 : vector<1x32xf32> to vector<16x32xf32>
    %245 = arith.addf %241, %244 : vector<16x32xf32>
    %c1_80 = arith.constant 1 : index
    %c0_81 = arith.constant 0 : index
    %c0_82 = arith.constant 0 : index
    %246 = vector.load %arg9[%c1_80, %c0_81, %c0_82] : memref<2x2x32xf32, #tpu.memory_space<vmem>>, vector<1x2x32xf32>
    %247 = vector.shape_cast %246 : vector<1x2x32xf32> to vector<2x32xf32>
    %248 = arith.addf %245, %174 : vector<16x32xf32>
    %249 = vector.extract_strided_slice %247 {offsets = [0, 0], sizes = [1, 32], strides = [1, 1]} : vector<2x32xf32> to vector<1x32xf32>
    %250 = vector.extract_strided_slice %247 {offsets = [1, 0], sizes = [1, 32], strides = [1, 1]} : vector<2x32xf32> to vector<1x32xf32>
    %cst_83 = arith.constant dense<0.000000e+00> : vector<16xf32>
    %251 = vector.multi_reduction <add>, %248, %cst_83 [1] : vector<16x32xf32> to vector<16xf32>
    %252 = vector.shape_cast %251 : vector<16xf32> to vector<16x1xf32>
    %cst_84 = arith.constant 3.200000e+01 : f32
    %253 = vector.broadcast %cst_84 : f32 to vector<16x1xf32>
    %254 = arith.divf %252, %253 : vector<16x1xf32>
    %255 = vector.broadcast %254 : vector<16x1xf32> to vector<16x32xf32>
    %256 = arith.subf %248, %255 : vector<16x32xf32>
    %257 = arith.mulf %256, %256 : vector<16x32xf32>
    %cst_85 = arith.constant dense<0.000000e+00> : vector<16xf32>
    %258 = vector.multi_reduction <add>, %257, %cst_85 [1] : vector<16x32xf32> to vector<16xf32>
    %259 = vector.shape_cast %258 : vector<16xf32> to vector<16x1xf32>
    %cst_86 = arith.constant 3.200000e+01 : f32
    %260 = vector.broadcast %cst_86 : f32 to vector<16x1xf32>
    %261 = arith.divf %259, %260 : vector<16x1xf32>
    %cst_87 = arith.constant 9.99999996E-13 : f32
    %262 = vector.broadcast %cst_87 : f32 to vector<16x1xf32>
    %263 = arith.addf %261, %262 : vector<16x1xf32>
    %264 = math.rsqrt %263 : vector<16x1xf32>
    %265 = vector.broadcast %264 : vector<16x1xf32> to vector<16x32xf32>
    %266 = arith.mulf %256, %265 : vector<16x32xf32>
    %267 = vector.broadcast %249 : vector<1x32xf32> to vector<16x32xf32>
    %268 = arith.mulf %266, %267 : vector<16x32xf32>
    %269 = vector.broadcast %250 : vector<1x32xf32> to vector<16x32xf32>
    %270 = arith.addf %268, %269 : vector<16x32xf32>
    %271 = arith.truncf %270 : vector<16x32xf32> to vector<16x32xbf16>
    %c1_88 = arith.constant 1 : index
    %c0_89 = arith.constant 0 : index
    %c0_90 = arith.constant 0 : index
    %272 = vector.load %arg10[%c1_88, %c0_89, %c0_90] : memref<2x32x64xbf16, #tpu.memory_space<vmem>>, vector<1x32x64xbf16>
    %273 = vector.shape_cast %272 : vector<1x32x64xbf16> to vector<32x64xbf16>
    %cst_91 = arith.constant dense<0.000000e+00> : vector<16x64xf32>
    %274 = tpu.matmul %271, %273, %cst_91 {dimension_numbers = #tpu.dot_dimension_numbers<[1], [0], [0], [1], [0, 0, 1, 1], [], []>} : vector<16x32xbf16>, vector<32x64xbf16>, vector<16x64xf32> -> vector<16x64xf32>
    %c1_92 = arith.constant 1 : index
    %c0_93 = arith.constant 0 : index
    %c0_94 = arith.constant 0 : index
    %275 = vector.load %arg11[%c1_92, %c0_93, %c0_94] : memref<2x1x64xf32, #tpu.memory_space<vmem>>, vector<1x1x64xf32>
    %276 = vector.shape_cast %275 : vector<1x1x64xf32> to vector<1x64xf32>
    %277 = vector.broadcast %276 : vector<1x64xf32> to vector<16x64xf32>
    %278 = arith.addf %274, %277 : vector<16x64xf32>
    %cst_95 = arith.constant 5.000000e-01 : f32
    %279 = vector.broadcast %cst_95 : f32 to vector<16x64xf32>
    %280 = arith.mulf %279, %278 : vector<16x64xf32>
    %cst_96 = arith.constant 4.471500e-02 : f32
    %281 = vector.broadcast %cst_96 : f32 to vector<16x64xf32>
    %282 = arith.mulf %281, %278 : vector<16x64xf32>
    %283 = arith.mulf %282, %278 : vector<16x64xf32>
    %284 = arith.mulf %283, %278 : vector<16x64xf32>
    %285 = arith.addf %278, %284 : vector<16x64xf32>
    %cst_97 = arith.constant 0.797884583 : f32
    %286 = vector.broadcast %cst_97 : f32 to vector<16x64xf32>
    %287 = arith.mulf %286, %285 : vector<16x64xf32>
    %288 = math.tanh %287 : vector<16x64xf32>
    %cst_98 = arith.constant 1.000000e+00 : f32
    %289 = vector.broadcast %cst_98 : f32 to vector<16x64xf32>
    %290 = arith.addf %289, %288 : vector<16x64xf32>
    %291 = arith.mulf %280, %290 : vector<16x64xf32>
    %292 = arith.truncf %291 : vector<16x64xf32> to vector<16x64xbf16>
    %c1_99 = arith.constant 1 : index
    %c0_100 = arith.constant 0 : index
    %c0_101 = arith.constant 0 : index
    %293 = vector.load %arg12[%c1_99, %c0_100, %c0_101] : memref<2x64x32xbf16, #tpu.memory_space<vmem>>, vector<1x64x32xbf16>
    %294 = vector.shape_cast %293 : vector<1x64x32xbf16> to vector<64x32xbf16>
    %cst_102 = arith.constant dense<0.000000e+00> : vector<16x32xf32>
    %295 = tpu.matmul %292, %294, %cst_102 {dimension_numbers = #tpu.dot_dimension_numbers<[1], [0], [0], [1], [0, 0, 1, 1], [], []>} : vector<16x64xbf16>, vector<64x32xbf16>, vector<16x32xf32> -> vector<16x32xf32>
    %c1_103 = arith.constant 1 : index
    %c0_104 = arith.constant 0 : index
    %c0_105 = arith.constant 0 : index
    %296 = vector.load %arg13[%c1_103, %c0_104, %c0_105] : memref<2x1x32xf32, #tpu.memory_space<vmem>>, vector<1x1x32xf32>
    %297 = vector.shape_cast %296 : vector<1x1x32xf32> to vector<1x32xf32>
    %298 = vector.broadcast %297 : vector<1x32xf32> to vector<16x32xf32>
    %299 = arith.addf %295, %298 : vector<16x32xf32>
    %c1_106 = arith.constant 1 : index
    %c0_107 = arith.constant 0 : index
    %c0_108 = arith.constant 0 : index
    %300 = vector.load %arg14[%c1_106, %c0_107, %c0_108] : memref<2x2x32xf32, #tpu.memory_space<vmem>>, vector<1x2x32xf32>
    %301 = vector.shape_cast %300 : vector<1x2x32xf32> to vector<2x32xf32>
    %302 = arith.addf %299, %270 : vector<16x32xf32>
    %303 = vector.extract_strided_slice %301 {offsets = [0, 0], sizes = [1, 32], strides = [1, 1]} : vector<2x32xf32> to vector<1x32xf32>
    %304 = vector.extract_strided_slice %301 {offsets = [1, 0], sizes = [1, 32], strides = [1, 1]} : vector<2x32xf32> to vector<1x32xf32>
    %cst_109 = arith.constant dense<0.000000e+00> : vector<16xf32>
    %305 = vector.multi_reduction <add>, %302, %cst_109 [1] : vector<16x32xf32> to vector<16xf32>
    %306 = vector.shape_cast %305 : vector<16xf32> to vector<16x1xf32>
    %cst_110 = arith.constant 3.200000e+01 : f32
    %307 = vector.broadcast %cst_110 : f32 to vector<16x1xf32>
    %308 = arith.divf %306, %307 : vector<16x1xf32>
    %309 = vector.broadcast %308 : vector<16x1xf32> to vector<16x32xf32>
    %310 = arith.subf %302, %309 : vector<16x32xf32>
    %311 = arith.mulf %310, %310 : vector<16x32xf32>
    %cst_111 = arith.constant dense<0.000000e+00> : vector<16xf32>
    %312 = vector.multi_reduction <add>, %311, %cst_111 [1] : vector<16x32xf32> to vector<16xf32>
    %313 = vector.shape_cast %312 : vector<16xf32> to vector<16x1xf32>
    %cst_112 = arith.constant 3.200000e+01 : f32
    %314 = vector.broadcast %cst_112 : f32 to vector<16x1xf32>
    %315 = arith.divf %313, %314 : vector<16x1xf32>
    %cst_113 = arith.constant 9.99999996E-13 : f32
    %316 = vector.broadcast %cst_113 : f32 to vector<16x1xf32>
    %317 = arith.addf %315, %316 : vector<16x1xf32>
    %318 = math.rsqrt %317 : vector<16x1xf32>
    %319 = vector.broadcast %318 : vector<16x1xf32> to vector<16x32xf32>
    %320 = arith.mulf %310, %319 : vector<16x32xf32>
    %321 = vector.broadcast %303 : vector<1x32xf32> to vector<16x32xf32>
    %322 = arith.mulf %320, %321 : vector<16x32xf32>
    %323 = vector.broadcast %304 : vector<1x32xf32> to vector<16x32xf32>
    %324 = arith.addf %322, %323 : vector<16x32xf32>
    %325 = vector.extract_strided_slice %324 {offsets = [0, 0], sizes = [1, 32], strides = [1, 1]} : vector<16x32xf32> to vector<1x32xf32>
    %326 = vector.extract_strided_slice %324 {offsets = [8, 0], sizes = [1, 32], strides = [1, 1]} : vector<16x32xf32> to vector<1x32xf32>
    %327 = tpu.concatenate %325, %326 in 0 : vector<1x32xf32>, vector<1x32xf32> -> vector<2x32xf32>
    %328 = arith.truncf %327 : vector<2x32xf32> to vector<2x32xbf16>
    %c0_114 = arith.constant 0 : index
    %c0_115 = arith.constant 0 : index
    %329 = vector.load %arg15[%c0_114, %c0_115] : memref<32x32xbf16, #tpu.memory_space<vmem>>, vector<32x32xbf16>
    %cst_116 = arith.constant dense<0.000000e+00> : vector<2x32xf32>
    %330 = tpu.matmul %328, %329, %cst_116 {dimension_numbers = #tpu.dot_dimension_numbers<[1], [0], [0], [1], [0, 0, 1, 1], [], []>} : vector<2x32xbf16>, vector<32x32xbf16>, vector<2x32xf32> -> vector<2x32xf32>
    %c0_117 = arith.constant 0 : index
    %c0_118 = arith.constant 0 : index
    %331 = vector.load %arg16[%c0_117, %c0_118] : memref<1x32xf32, #tpu.memory_space<vmem>>, vector<1x32xf32>
    %332 = vector.broadcast %331 : vector<1x32xf32> to vector<2x32xf32>
    %333 = arith.addf %330, %332 : vector<2x32xf32>
    %334 = math.tanh %333 : vector<2x32xf32>
    %335 = arith.truncf %334 : vector<2x32xf32> to vector<2x32xbf16>
    %c0_119 = arith.constant 0 : index
    %c0_120 = arith.constant 0 : index
    %336 = vector.load %arg17[%c0_119, %c0_120] : memref<32x3xbf16, #tpu.memory_space<vmem>>, vector<32x3xbf16>
    %cst_121 = arith.constant dense<0.000000e+00> : vector<2x3xf32>
    %337 = tpu.matmul %335, %336, %cst_121 {dimension_numbers = #tpu.dot_dimension_numbers<[1], [0], [0], [1], [0, 0, 1, 1], [], []>} : vector<2x32xbf16>, vector<32x3xbf16>, vector<2x3xf32> -> vector<2x3xf32>
    %c0_122 = arith.constant 0 : index
    %c0_123 = arith.constant 0 : index
    %338 = vector.load %arg18[%c0_122, %c0_123] : memref<1x3xf32, #tpu.memory_space<vmem>>, vector<1x3xf32>
    %339 = vector.broadcast %338 : vector<1x3xf32> to vector<2x3xf32>
    %340 = arith.addf %337, %339 : vector<2x3xf32>
    %c0_124 = arith.constant 0 : index
    %c0_125 = arith.constant 0 : index
    %341 = vector.load %arg19[%c0_124, %c0_125] : memref<2x3xf32, #tpu.memory_space<vmem>>, vector<2x3xf32>
    tpu.vector_store %arg19[%c0_124, %c0_125], %340 {strides = array<i32>} : memref<2x3xf32, #tpu.memory_space<vmem>>, vector<2x3xf32>,
    %cst_126 = arith.constant dense<0xFF800000> : vector<2xf32>
    %342 = vector.multi_reduction <maximumf>, %340, %cst_126 [1] : vector<2x3xf32> to vector<2xf32>
    %343 = vector.shape_cast %342 : vector<2xf32> to vector<2x1xf32>
    %344 = vector.broadcast %343 : vector<2x1xf32> to vector<2x3xf32>
    %345 = arith.subf %340, %344 : vector<2x3xf32>
    %346 = math.exp %345 : vector<2x3xf32>
    %cst_127 = arith.constant dense<0.000000e+00> : vector<2xf32>
    %347 = vector.multi_reduction <add>, %346, %cst_127 [1] : vector<2x3xf32> to vector<2xf32>
    %348 = vector.shape_cast %347 : vector<2xf32> to vector<2x1xf32>
    %349 = math.log %348 : vector<2x1xf32>
    %350 = vector.broadcast %349 : vector<2x1xf32> to vector<2x3xf32>
    %351 = arith.subf %345, %350 : vector<2x3xf32>
    %352 = tpu.iota {dimensions = array<i32: 1>} : vector<2x3xi32>
    %c0_128 = arith.constant 0 : index
    %c0_129 = arith.constant 0 : index
    %353 = vector.load %arg3[%c0_128, %c0_129] : memref<2x1xi32, #tpu.memory_space<vmem>>, vector<2x1xi32>
    %354 = vector.broadcast %353 : vector<2x1xi32> to vector<2x3xi32>
    %355 = arith.cmpi eq, %352, %354 : vector<2x3xi32>
    %cst_130 = arith.constant 0.000000e+00 : f32
    %356 = vector.broadcast %cst_130 : f32 to vector<2x3xf32>
    %357 = arith.select %355, %351, %356 : vector<2x3xi1>, vector<2x3xf32>
    %cst_131 = arith.constant dense<0.000000e+00> : vector<2xf32>
    %358 = vector.multi_reduction <add>, %357, %cst_131 [1] : vector<2x3xf32> to vector<2xf32>
    %359 = vector.shape_cast %358 : vector<2xf32> to vector<2x1xf32>
    %cst_132 = arith.constant 0.000000e+00 : f32
    %360 = vector.broadcast %cst_132 : f32 to vector<2x1xf32>
    %361 = arith.subf %360, %359 : vector<2x1xf32>
    %cst_133 = arith.constant dense<0.000000e+00> : vector<1xf32>
    %362 = vector.multi_reduction <add>, %361, %cst_133 [0] : vector<2x1xf32> to vector<1xf32>
    %363 = vector.shape_cast %362 : vector<1xf32> to vector<1x1xf32>
    %cst_134 = arith.constant 2.000000e+00 : f32
    %364 = vector.broadcast %cst_134 : f32 to vector<1x1xf32>
    %365 = arith.divf %363, %364 : vector<1x1xf32>
    %c0_135 = arith.constant 0 : index
    %c0_136 = arith.constant 0 : index
    %366 = vector.load %arg20[%c0_135, %c0_136] : memref<1x1xf32, #tpu.memory_space<vmem>>, vector<1x1xf32>
    tpu.vector_store %arg20[%c0_135, %c0_136], %365 {strides = array<i32>} : memref<1x1xf32, #tpu.memory_space<vmem>>, vector<1x1xf32>,
    return
  }
  func.func @transform_0(%arg0: i32) -> (i32, i32) {
    %c0_i32 = arith.constant 0 : i32
    %c0_i32_0 = arith.constant 0 : i32
    %c0_i32_1 = arith.constant 0 : i32
    return %c0_i32, %c0_i32_0 : i32, i32
  }
  func.func @transform_1(%arg0: i32) -> (i32, i32) {
    %c0_i32 = arith.constant 0 : i32
    %c0_i32_0 = arith.constant 0 : i32
    %c0_i32_1 = arith.constant 0 : i32
    return %c0_i32, %c0_i32_0 : i32, i32
  }
  func.func @transform_2(%arg0: i32) -> (i32, i32) {
    %c0_i32 = arith.constant 0 : i32
    %c0_i32_0 = arith.constant 0 : i32
    %c0_i32_1 = arith.constant 0 : i32
    return %c0_i32, %c0_i32_0 : i32, i32
  }
  func.func @transform_3(%arg0: i32) -> (i32, i32) {
    %c0_i32 = arith.constant 0 : i32
    %c0_i32_0 = arith.constant 0 : i32
    %c0_i32_1 = arith.constant 0 : i32
    return %c0_i32, %c0_i32_0 : i32, i32
  }
  func.func @transform_4(%arg0: i32) -> (i32, i32, i32) {
    %c0_i32 = arith.constant 0 : i32
    %c0_i32_0 = arith.constant 0 : i32
    %c0_i32_1 = arith.constant 0 : i32
    %c0_i32_2 = arith.constant 0 : i32
    return %c0_i32, %c0_i32_0, %c0_i32_1 : i32, i32, i32
  }
  func.func @transform_5(%arg0: i32) -> (i32, i32, i32) {
    %c0_i32 = arith.constant 0 : i32
    %c0_i32_0 = arith.constant 0 : i32
    %c0_i32_1 = arith.constant 0 : i32
    %c0_i32_2 = arith.constant 0 : i32
    return %c0_i32, %c0_i32_0, %c0_i32_1 : i32, i32, i32
  }
  func.func @transform_6(%arg0: i32) -> (i32, i32, i32) {
    %c0_i32 = arith.constant 0 : i32
    %c0_i32_0 = arith.constant 0 : i32
    %c0_i32_1 = arith.constant 0 : i32
    %c0_i32_2 = arith.constant 0 : i32
    return %c0_i32, %c0_i32_0, %c0_i32_1 : i32, i32, i32
  }
  func.func @transform_7(%arg0: i32) -> (i32, i32, i32) {
    %c0_i32 = arith.constant 0 : i32
    %c0_i32_0 = arith.constant 0 : i32
    %c0_i32_1 = arith.constant 0 : i32
    %c0_i32_2 = arith.constant 0 : i32
    return %c0_i32, %c0_i32_0, %c0_i32_1 : i32, i32, i32
  }
  func.func @transform_8(%arg0: i32) -> (i32, i32, i32) {
    %c0_i32 = arith.constant 0 : i32
    %c0_i32_0 = arith.constant 0 : i32
    %c0_i32_1 = arith.constant 0 : i32
    %c0_i32_2 = arith.constant 0 : i32
    return %c0_i32, %c0_i32_0, %c0_i32_1 : i32, i32, i32
  }
  func.func @transform_9(%arg0: i32) -> (i32, i32, i32) {
    %c0_i32 = arith.constant 0 : i32
    %c0_i32_0 = arith.constant 0 : i32
    %c0_i32_1 = arith.constant 0 : i32
    %c0_i32_2 = arith.constant 0 : i32
    return %c0_i32, %c0_i32_0, %c0_i32_1 : i32, i32, i32
  }
  func.func @transform_10(%arg0: i32) -> (i32, i32, i32) {
    %c0_i32 = arith.constant 0 : i32
    %c0_i32_0 = arith.constant 0 : i32
    %c0_i32_1 = arith.constant 0 : i32
    %c0_i32_2 = arith.constant 0 : i32
    return %c0_i32, %c0_i32_0, %c0_i32_1 : i32, i32, i32
  }
  func.func @transform_11(%arg0: i32) -> (i32, i32, i32) {
    %c0_i32 = arith.constant 0 : i32
    %c0_i32_0 = arith.constant 0 : i32
    %c0_i32_1 = arith.constant 0 : i32
    %c0_i32_2 = arith.constant 0 : i32
    return %c0_i32, %c0_i32_0, %c0_i32_1 : i32, i32, i32
  }
  func.func @transform_12(%arg0: i32) -> (i32, i32, i32) {
    %c0_i32 = arith.constant 0 : i32
    %c0_i32_0 = arith.constant 0 : i32
    %c0_i32_1 = arith.constant 0 : i32
    %c0_i32_2 = arith.constant 0 : i32
    return %c0_i32, %c0_i32_0, %c0_i32_1 : i32, i32, i32
  }
  func.func @transform_13(%arg0: i32) -> (i32, i32, i32) {
    %c0_i32 = arith.constant 0 : i32
    %c0_i32_0 = arith.constant 0 : i32
    %c0_i32_1 = arith.constant 0 : i32
    %c0_i32_2 = arith.constant 0 : i32
    return %c0_i32, %c0_i32_0, %c0_i32_1 : i32, i32, i32
  }
  func.func @transform_14(%arg0: i32) -> (i32, i32) {
    %c0_i32 = arith.constant 0 : i32
    %c0_i32_0 = arith.constant 0 : i32
    %c0_i32_1 = arith.constant 0 : i32
    return %c0_i32, %c0_i32_0 : i32, i32
  }
  func.func @transform_15(%arg0: i32) -> (i32, i32) {
    %c0_i32 = arith.constant 0 : i32
    %c0_i32_0 = arith.constant 0 : i32
    %c0_i32_1 = arith.constant 0 : i32
    return %c0_i32, %c0_i32_0 : i32, i32
  }
  func.func @transform_16(%arg0: i32) -> (i32, i32) {
    %c0_i32 = arith.constant 0 : i32
    %c0_i32_0 = arith.constant 0 : i32
    %c0_i32_1 = arith.constant 0 : i32
    return %c0_i32, %c0_i32_0 : i32, i32
  }
  func.func @transform_17(%arg0: i32) -> (i32, i32) {
    %c0_i32 = arith.constant 0 : i32
    %c0_i32_0 = arith.constant 0 : i32
    %c0_i32_1 = arith.constant 0 : i32
    return %c0_i32, %c0_i32_0 : i32, i32
  }
  func.func @transform_18(%arg0: i32) -> (i32, i32) {
    %c0_i32 = arith.constant 0 : i32
    %c0_i32_0 = arith.constant 0 : i32
    %c0_i32_1 = arith.constant 0 : i32
    return %c0_i32, %c0_i32_0 : i32, i32
  }
  func.func @transform_19(%arg0: i32) -> (i32, i32) {
    %c0_i32 = arith.constant 0 : i32
    %c0_i32_0 = arith.constant 0 : i32
    %c0_i32_1 = arith.constant 0 : i32
    return %c0_i32, %c0_i32_0 : i32, i32
  }
}

</mosaic_0001>

<bundles_post_ra>
// kernel: knowbert_forward.1
= control target key start
LH: loop header
LB: loop body
LE: loop exit
PB: predicated region body
PF: predicated region fallthrough
CT: control target
= control target key end

     0   :  { %s3282_s0 = inlined_call_operand.vmem [shape: f32[16,32], index: 0, kind: input, shape index: {}]   ;;  %s3283_s1 = inlined_call_operand.vmem [shape: f32[16,16], index: 1, kind: input, shape index: {}]   ;;  %s3284_s2 = inlined_call_operand.vmem [shape: s32[2,1], index: 2, kind: input, shape index: {}]   ;;  %s3285_s3 = inlined_call_operand.vmem [shape: f32[2,32], index: 3, kind: input, shape index: {}]   ;;  %s3286_s4 = inlined_call_operand.vmem [shape: bf16[2,32,96], index: 4, kind: input, shape index: {}]   ;;  %s3287_s5 = inlined_call_operand.vmem [shape: f32[2,1,96], index: 5, kind: input, shape index: {}]   ;;  %s3288_s6 = inlined_call_operand.vmem [shape: bf16[2,32,32], index: 6, kind: input, shape index: {}]   ;;  %s3289_s7 = inlined_call_operand.vmem [shape: f32[2,1,32], index: 7, kind: input, shape index: {}, may-alias: {7,12}]   ;;  %s3290_s8 = inlined_call_operand.vmem [shape: f32[2,2,32], index: 8, kind: input, shape index: {}, may-alias: {8,13}]   ;;  %s3291_s9 = inlined_call_operand.vmem [shape: bf16[2,32,64], index: 9, kind: input, shape index: {}]   ;;  %s3292_s10 = inlined_call_operand.vmem [shape: f32[2,1,64], index: 10, kind: input, shape index: {}]   ;;  %s3293_s11 = inlined_call_operand.vmem [shape: bf16[2,64,32], index: 11, kind: input, shape index: {}]   ;;  %s3294_s12 = inlined_call_operand.vmem [shape: f32[2,1,32], index: 12, kind: input, shape index: {}, may-alias: {7,12}]   ;;  %s3295_s13 = inlined_call_operand.vmem [shape: f32[2,2,32], index: 13, kind: input, shape index: {}, may-alias: {8,13}]   ;;  %s3296_s14 = inlined_call_operand.vmem [shape: bf16[32,32], index: 14, kind: input, shape index: {}]   ;;  %s3297_s15 = inlined_call_operand.vmem [shape: f32[1,32], index: 15, kind: input, shape index: {}]   ;;  %s3298_s16 = inlined_call_operand.vmem [shape: bf16[32,3], index: 16, kind: input, shape index: {}]   ;;  %s3299_s17 = inlined_call_operand.vmem [shape: f32[1,3], index: 17, kind: input, shape index: {}]   ;;  %s3300_s18 = inlined_call_operand.hbm [shape: f32[2,3], index: 18, kind: output, shape index: {0}]   ;;  %s3301_s19 = inlined_call_operand.hbm [shape: f32[1,1], index: 19, kind: output, shape index: {1}]  }
   0x1   :  { %3305 = sst [smem:[#allocation8_spill]] %s3282_s0 }
   0x2   :  { %3306 = sst [smem:[#allocation9_spill]] %s3283_s1 }
   0x3   :  { %3307 = sst [smem:[#allocation10_spill]] %s3284_s2 }
   0x4   :  { %3308 = sst [smem:[#allocation11_spill]] %s3285_s3 }
   0x5   :  { %25 = vsyncpa [#allocation3], 0  ;;  %s3309_s20 = sld [smem:[#allocation8_spill]]  ;;  %vm67_vm0 = vcmask 261120  }
   0xb   :  { %v65_v0 = vld [vmem:[%s3309_s20] sm:$0xff]  ;;  %v66_v1 = vld [vmem:[%s3309_s20 + $0x8] sm:$0xff] }
   0xc   :  { %v68_v2 = vsel %vm67_vm0, %v65_v0, 0.0  ;;  %v71_v3 = vsel %vm67_vm0, %v66_v1, 0.0 }
   0xd   :  { %69 = vadd.xlane.f32.xlu0 %v68_v2 }
  0x11   :  { %72 = vadd.xlane.f32.xlu0 %v71_v3 }
  0x12   :  { %26 = vsyncpa [#allocation5], 0  ;;  %v2545_v14 = vld [vmem:[%s3286_s4 + $0x8] sm:$0xff]   ;;  %v2711_v15 = vmov 0.0   ;;  %vm2712_vm1 = vmmov 0   ;;  %v2546_v16 = vld [vmem:[%s3286_s4] sm:$0xff]   ;;  %v95_v23 = vlaneseq }
  0x13   :  { %2317 = vmatprep.subr.bf16.mxu0 %v2711_v15  ;;  %2321 = vmatprep.mubr.msk.bf16.mxu0 %vm2712_vm1, %v2711_v15  ;;  %s3310_s26 = sld [smem:[#allocation11_spill]]  ;;  %v2165_v40 = vld [vmem:[%s3287_s5] ss:$0 sm:$0xff]  ;;  %s2713_s29 = smov 112   ;;  %vm187_vm2 = vcmask 64512   ;;  %vm398_vm3 = vcmask 130048  }
  0x14   :  { %2318 = vmatpush3.bf16.msra.mxu0 %v2545_v14  ;;  %2325 = vmatprep.subr.bf16.mxu1 %v2711_v15  ;;  %v96_v24 = vshrl.u32 %v95_v23, 7  ;;  %s2714_s0 = smov 120   ;;  %s2715_s30 = smov 104   ;;  %vm707_vm4 = vcmask 195584   ;;  %vm945_vm5 = vcmask 523264   ;;  %vm1962_vm6 = vcmask 1040384  }
  0x15   :  { %2319 = vmatprep.subr.bf16.mxu0 %v2711_v15  ;;  %2327 = vmatprep.mubr.msk.bf16.mxu1 %vm2712_vm1, %v2711_v15  ;;  %s2716_s20 = smov 96   ;;  %s3311_s22 = sld [smem:[#allocation9_spill]]  ;;  %vm2099_vm7 = vcmask 17408  }
  0x16   :  { %v2849_v25 = vsub.s32 0, %v96_v24  ;;  %v2855_v30 = vsub.s32 1, %v96_v24  ;;  %s2717_s24 = smov 64   ;;  %s2718_s28 = smov 8  }
  0x17   :  { %s2719_s21 = smov 16   ;;  %s3304_s1 = smov 24  }
  0x18   :  { %2320 = vmatpush3.bf16.msra.mxu0 %v2546_v16 }
  0x19   :  { %2331 = vmatprep.subr.bf16.mxu0 %v2711_v15  ;;  %v64_v26 = vld [vmem:[%s3310_s26] sm:$0x3] }
  0x1a   :  { %v98_v29 = vrot.slane %v64_v26, %v2849_v25  ;;  %v104_v34 = vrot.slane %v64_v26, %v2855_v30 }
  0x1b   :  { %v2919_v59 = vld [vmem:[%s3311_s22] sm:$0xff] }
  0x96   :  { %v70_v4 = vpop.xlane.xlu0 %69 }
  0x97   :  { %v75_v5 = vmul.f32 0.03125, %v70_v4 }
  0x99   :  { %v77_v6 = vsub.f32 %v65_v0, %v75_v5  ;;  %v2925_v0 = vld [vmem:[%s3311_s22 + $0x8] sm:$0xff] }
  0x9a   :  { %v73_v7 = vpop.xlane.xlu0 %72 }
  0x9b   :  { %v76_v8 = vmul.f32 0.03125, %v73_v7  ;;  %v79_v9 = vmul.f32 %v77_v6, %v77_v6 }
  0x9d   :  { %v78_v10 = vsub.f32 %v66_v1, %v76_v8  ;;  %v81_v11 = vsel %vm67_vm0, %v79_v9, 0.0 }
  0x9e   :  { %82 = vadd.xlane.f32.xlu1 %v81_v11 }
  0x9f   :  { %v80_v12 = vmul.f32 %v78_v10, %v78_v10 }
  0xa1   :  { %v84_v13 = vsel %vm67_vm0, %v80_v12, 0.0 }
  0xa2   :  { %85 = vadd.xlane.f32.xlu1 %v84_v13 }
 0x127   :  { %v83_v17 = vpop.xlane.xlu1 %82 }
 0x128   :  { %v87_v18 = vmul.f32 0.03125, %v83_v17 }
 0x12a   :  { %v89_v19 = vadd.f32 1e-12, %v87_v18 }
 0x12b   :  { %v86_v20 = vpop.xlane.xlu1 %85 }
 0x12c   :  { %2569 = vrsqrt.f32 %v89_v19  ;;  %v88_v21 = vmul.f32 0.03125, %v86_v20 }
 0x12e   :  { %v90_v22 = vadd.f32 1e-12, %v88_v21 }
 0x130   :  { %2571 = vrsqrt.f32 %v90_v22 }
 0x139   :  { %v2570_v27 = vpop.eup %2569 }
 0x13a   :  { %v93_v28 = vmul.f32 %v2570_v27, %v77_v6 }
 0x13c   :  { %v99_v33 = vmul.f32 %v98_v29, %v93_v28 }
 0x13d   :  { %v2572_v31 = vpop.eup %2571 }
 0x13e   :  { %v94_v32 = vmul.f32 %v2572_v31, %v78_v10  ;;  %v2858_v36 = vadd.f32 %v104_v34, %v99_v33 }
 0x140   :  { %v100_v35 = vmul.f32 %v98_v29, %v94_v32 }
 0x142   :  { %v2860_v37 = vadd.f32 %v104_v34, %v100_v35 }
 0x144   :  { %v109_v38 = vpack.c.bf16 %v2860_v37, %v2858_v36 }
 0x146   :  { %2322 = vmatmul.mubr.msk.bf16.vlgmr.msra.gmra.mxu0 %vm67_vm0, %v109_v38 }
 0x147   :  { %2333 = vmatprep.mubr.msk.bf16.mxu0 %vm2712_vm1, %v2711_v15 }
 0x206   :  { %v170_v39 = vpop.f32.mrf.mxu0 }
 0x207   :  { %v171_v43 = vadd.f32 %v2165_v40, %v170_v39 }
 0x208   :  { %v2323_v41 = vpop.f32.mrf.mxu0 }
 0x20a   :  { %v173_v42 = vpop.f32.mrf.mxu0 }
 0x20b   :  { %v174_v44 = vadd.f32 %v2165_v40, %v173_v42 }
 0x20c   :  { %v2324_v45 = vpop.f32.mrf.mxu0 }
 0x20d   :  { %v2870_v46 = vpack.c.bf16 %v174_v44, %v171_v43 }
 0x20f   :  { %181 = vrot.lane.b32.xlu1 %v2870_v46, %s2713_s29  ;;  %179 = vrot.lane.b32.xlu0 %v2870_v46, %s2714_s0 }
 0x213   :  { %183 = vrot.lane.b32.xlu1 %v2870_v46, %s2715_s30 }
 0x217   :  { %185 = vrot.lane.b32.xlu1 %v2870_v46, %s2716_s20 }
 0x281   :  { %v2880_v47 = vpop.permute.xlu1 %181  ;;  %v2882_v48 = vpop.permute.xlu0 %179 }
 0x282   :  { %284 = vrot.lane.b32.xlu1 %v2880_v47, %s2716_s20  ;;  %235 = vrot.lane.b32.xlu0 %v2882_v48, %s2716_s20 }
 0x285   :  { %v2888_v49 = vpop.permute.xlu1 %183 }
 0x286   :  { %333 = vrot.lane.b32.xlu0 %v2888_v49, %s2716_s20 }
 0x289   :  { %v186_v50 = vpop.permute.xlu1 %185 }
 0x28a   :  { %v192_v51 = vsel %vm187_vm2, %v186_v50, 0 }
 0x28b   :  { %2326 = vmatpush3.bf16.xpose.msra.mxu1 %v192_v51 }
 0x28c   :  { %2337 = vmatprep.subr.bf16.mxu1 %v2711_v15 }
 0x292   :  { %2328 = vmatmul.mubr.msk.bf16.vlgmr.msra.gmra.mxu1 %vm187_vm2, %v2870_v46 }
 0x293   :  { %2339 = vmatprep.mubr.msk.bf16.mxu1 %vm2712_vm1, %v2711_v15 }
 0x2f4   :  { %v285_v52 = vpop.permute.xlu1 %284  ;;  %v236_v53 = vpop.permute.xlu0 %235 }
 0x2f5   :  { %v290_v54 = vsel %vm187_vm2, %v285_v52, 0  ;;  %v241_v55 = vsel %vm187_vm2, %v236_v53, 0 }
 0x2f6   :  { %2332 = vmatpush3.bf16.xpose.msra.mxu0 %v241_v55  ;;  %2338 = vmatpush3.bf16.xpose.msra.mxu1 %v290_v54 }
 0x2f7   :  { %2343 = vmatprep.subr.bf16.mxu0 %v2711_v15  ;;  %2349 = vmatprep.subr.bf16.mxu1 %v2711_v15 }
 0x2f8   :  { %v334_v56 = vpop.permute.xlu0 %333 }
 0x2f9   :  { %v339_v57 = vsel %vm187_vm2, %v334_v56, 0 }
 0x2fd   :  { %2334 = vmatmul.mubr.msk.bf16.vlgmr.msra.gmra.mxu0 %vm187_vm2, %v2882_v48  ;;  %2340 = vmatmul.mubr.msk.bf16.vlgmr.msra.gmra.mxu1 %vm187_vm2, %v2880_v47 }
 0x2fe   :  { %2344 = vmatpush3.bf16.xpose.msra.mxu0 %v339_v57  ;;  %2345 = vmatprep.mubr.msk.bf16.mxu0 %vm2712_vm1, %v2711_v15 }
 0x2ff   :  { %2351 = vmatprep.mubr.msk.bf16.mxu1 %vm2712_vm1, %v2711_v15  ;;  %2355 = vmatprep.subr.bf16.mxu0 %v2711_v15 }
 0x305   :  { %2346 = vmatmul.mubr.msk.bf16.vlgmr.msra.gmra.mxu0 %vm187_vm2, %v2888_v49 }
 0x306   :  { %2357 = vmatprep.mubr.msk.bf16.mxu0 %vm2712_vm1, %v2711_v15 }
 0x352   :  { %v228_v58 = vpop.f32.mrf.mxu1 }
 0x353   :  { %v382_v60 = vmul.f32 0.35355338, %v228_v58 }
 0x354   :  { %v2329_v61 = vpop.f32.mrf.mxu1 }
 0x355   :  { %v390_v62 = vadd.f32 %v382_v60, %v2919_v59 }
 0x356   :  { %v231_v63 = vpop.f32.mrf.mxu1 }
 0x357   :  { %v383_v1 = vmul.f32 0.35355338, %v231_v63  ;;  %v399_v2 = vsel %vm398_vm3, %v390_v62, -inf }
 0x358   :  { %400 = vmax.xlane.f32.xlu1 %v399_v2  ;;  %v2330_v3 = vpop.f32.mrf.mxu1 }
 0x359   :  { %v391_v4 = vadd.f32 %v383_v1, %v2925_v0 }
 0x35b   :  { %v402_v5 = vsel %vm398_vm3, %v391_v4, -inf }
 0x35c   :  { %403 = vmax.xlane.f32.xlu0 %v402_v5 }
 0x3bd   :  { %v277_v6 = vpop.f32.mrf.mxu0  ;;  %v326_v7 = vpop.f32.mrf.mxu1 }
 0x3be   :  { %v384_v8 = vmul.f32 0.35355338, %v277_v6  ;;  %v386_v9 = vmul.f32 0.35355338, %v326_v7 }
 0x3bf   :  { %v2335_v10 = vpop.f32.mrf.mxu0  ;;  %v2341_v11 = vpop.f32.mrf.mxu1 }
 0x3c0   :  { %v394_v12 = vadd.f32 %v386_v9, %v2919_v59  ;;  %v392_v13 = vadd.f32 %v384_v8, %v2919_v59 }
 0x3c1   :  { %v280_v14 = vpop.f32.mrf.mxu0  ;;  %v329_v16 = vpop.f32.mrf.mxu1 }
 0x3c2   :  { %v385_v17 = vmul.f32 0.35355338, %v280_v14  ;;  %v387_v18 = vmul.f32 0.35355338, %v329_v16  ;;  %v411_v19 = vsel %vm398_vm3, %v394_v12, -inf  ;;  %v405_v20 = vsel %vm398_vm3, %v392_v13, -inf }
 0x3c3   :  { %412 = vmax.xlane.f32.xlu1 %v411_v19  ;;  %v2342_v21 = vpop.f32.mrf.mxu1  ;;  %406 = vmax.xlane.f32.xlu0 %v405_v20  ;;  %v2336_v22 = vpop.f32.mrf.mxu0 }
 0x3c4   :  { %v393_v24 = vadd.f32 %v385_v17, %v2925_v0  ;;  %v395_v29 = vadd.f32 %v387_v18, %v2925_v0 }
 0x3c5   :  { %v375_v26 = vpop.f32.mrf.mxu0 }
 0x3c6   :  { %v388_v27 = vmul.f32 0.35355338, %v375_v26  ;;  %v408_v28 = vsel %vm398_vm3, %v393_v24, -inf  ;;  %v414_v35 = vsel %vm398_vm3, %v395_v29, -inf }
 0x3c7   :  { %409 = vmax.xlane.f32.xlu0 %v408_v28  ;;  %v2347_v31 = vpop.f32.mrf.mxu0 }
 0x3c8   :  { %v396_v32 = vadd.f32 %v388_v27, %v2919_v59 }
 0x3c9   :  { %v378_v33 = vpop.f32.mrf.mxu0 }
 0x3ca   :  { %v389_v34 = vmul.f32 0.35355338, %v378_v33  ;;  %v417_v38 = vsel %vm398_vm3, %v396_v32, -inf }
 0x3cb   :  { %415 = vmax.xlane.f32.xlu0 %v414_v35  ;;  %418 = vmax.xlane.f32.xlu1 %v417_v38  ;;  %v2348_v39 = vpop.f32.mrf.mxu0 }
 0x3cc   :  { %v397_v40 = vadd.f32 %v389_v34, %v2925_v0 }
 0x3ce   :  { %v420_v41 = vsel %vm398_vm3, %v397_v40, -inf }
 0x3cf   :  { %421 = vmax.xlane.f32.xlu0 %v420_v41 }
 0x3dc   :  { %491 = vrot.lane.b32.xlu1 %v2870_v46, %s2717_s24 }
 0x3e1   :  { %v401_v42 = vpop.xlane.xlu1 %400 }
 0x3e2   :  { %v423_v45 = vsub.f32 %v390_v62, %v401_v42 }
 0x3e4   :  { %v431_v51 = vmul.f32 1.442695, %v423_v45 }
 0x3e5   :  { %v404_v43 = vpop.xlane.xlu0 %403 }
 0x3e6   :  { %v424_v44 = vsub.f32 %v391_v4, %v404_v43 }
 0x3e8   :  { %v433_v50 = vmul.f32 1.442695, %v424_v44 }
 0x3ea   :  { %2573 = vpow2.f32 %v433_v50 }
 0x3eb   :  { %2575 = vpow2.f32 %v431_v51 }
 0x3f7   :  { %v2574_v52 = vpop.eup %2573 }
 0x3f8   :  { %v450_v53 = vsel %vm398_vm3, %v2574_v52, 0.0  ;;  %v2576_v54 = vpop.eup %2575 }
 0x3f9   :  { %451 = vadd.xlane.f32.xlu0 %v450_v53  ;;  %v447_v55 = vsel %vm398_vm3, %v2576_v54, 0.0 }
 0x400   :  { %448 = vadd.xlane.f32.xlu1 %v447_v55 }
 0x44c   :  { %v413_v56 = vpop.xlane.xlu1 %412  ;;  %v407_v57 = vpop.xlane.xlu0 %406 }
 0x44d   :  { %v427_v58 = vsub.f32 %v394_v12, %v413_v56  ;;  %v425_v46 = vsub.f32 %v392_v13, %v407_v57 }
 0x44f   :  { %v435_v60 = vmul.f32 1.442695, %v425_v46  ;;  %v439_v61 = vmul.f32 1.442695, %v427_v58 }
 0x450   :  { %v410_v63 = vpop.xlane.xlu0 %409 }
 0x451   :  { %v426_v62 = vsub.f32 %v393_v24, %v410_v63  ;;  %2577 = vpow2.f32 %v435_v60 }
 0x452   :  { %2579 = vpow2.f32 %v439_v61 }
 0x453   :  { %v437_v1 = vmul.f32 1.442695, %v426_v62 }
 0x454   :  { %v416_v2 = vpop.xlane.xlu0 %415  ;;  %v419_v3 = vpop.xlane.xlu1 %418 }
 0x455   :  { %2581 = vpow2.f32 %v437_v1  ;;  %v428_v4 = vsub.f32 %v395_v29, %v416_v2  ;;  %v429_v5 = vsub.f32 %v396_v32, %v419_v3  ;;  %v2547_v3 = vld [vmem:[%s3288_s6 + $0x8] sm:$0xff]  }
 0x457   :  { %v441_v6 = vmul.f32 1.442695, %v428_v4  ;;  %v443_v7 = vmul.f32 1.442695, %v429_v5 }
 0x458   :  { %v492_v8 = vpop.permute.xlu1 %491  ;;  %v422_v9 = vpop.xlane.xlu0 %421 }
 0x459   :  { %2583 = vpow2.f32 %v441_v6  ;;  %v430_v10 = vsub.f32 %v397_v40, %v422_v9  ;;  %2350 = vmatpush3.bf16.msra.mxu1 %v492_v8  ;;  %v2548_v6 = vld [vmem:[%s3288_s6] sm:$0xff]  }
 0x45a   :  { %2585 = vpow2.f32 %v443_v7  ;;  %2361 = vmatprep.subr.bf16.mxu1 %v2711_v15 }
 0x45b   :  { %v445_v11 = vmul.f32 1.442695, %v430_v10 }
 0x45d   :  { %2587 = vpow2.f32 %v445_v11 }
 0x45e   :  { %v2578_v12 = vpop.eup %2577 }
 0x45f   :  { %v453_v13 = vsel %vm398_vm3, %v2578_v12, 0.0  ;;  %v2580_v14 = vpop.eup %2579 }
 0x460   :  { %454 = vadd.xlane.f32.xlu1 %v453_v13  ;;  %v459_v18 = vsel %vm398_vm3, %v2580_v14, 0.0 }
 0x462   :  { %v2582_v16 = vpop.eup %2581 }
 0x463   :  { %v456_v17 = vsel %vm398_vm3, %v2582_v16, 0.0 }
 0x464   :  { %457 = vadd.xlane.f32.xlu0 %v456_v17  ;;  %460 = vadd.xlane.f32.xlu1 %v459_v18 }
 0x466   :  { %v2584_v19 = vpop.eup %2583 }
 0x467   :  { %v2586_v20 = vpop.eup %2585  ;;  %v462_v21 = vsel %vm398_vm3, %v2584_v19, 0.0 }
 0x468   :  { %v465_v22 = vsel %vm398_vm3, %v2586_v20, 0.0  ;;  %463 = vadd.xlane.f32.xlu0 %v462_v21 }
 0x469   :  { %466 = vadd.xlane.f32.xlu1 %v465_v22 }
 0x46a   :  { %v2588_v24 = vpop.eup %2587 }
 0x46b   :  { %v468_v26 = vsel %vm398_vm3, %v2588_v24, 0.0 }
 0x46c   :  { %469 = vadd.xlane.f32.xlu0 %v468_v26 }
 0x47a   :  { %585 = vrot.lane.b32.xlu1 %v2880_v47, %s2717_s24 }
 0x47e   :  { %632 = vrot.lane.b32.xlu1 %v2888_v49, %s2717_s24 }
 0x482   :  { %538 = vrot.lane.b32.xlu0 %v2882_v48, %s2717_s24  ;;  %v452_v27 = vpop.xlane.xlu0 %451 }
 0x483   :  { %2589 = vrcp.f32 %v452_v27 }
 0x489   :  { %v449_v28 = vpop.xlane.xlu1 %448 }
 0x48a   :  { %2591 = vrcp.f32 %v449_v28 }
 0x490   :  { %v2590_v29 = vpop.eup %2589 }
 0x491   :  { %v480_v33 = vmul.f32 %v2590_v29, %v2574_v52 }
 0x497   :  { %v2592_v31 = vpop.eup %2591 }
 0x498   :  { %v479_v32 = vmul.f32 %v2592_v31, %v2576_v54 }
 0x49a   :  { %v487_v34 = vpack.c.bf16 %v480_v33, %v479_v32 }
 0x49c   :  { %2352 = vmatmul.mubr.msk.bf16.vlgmr.msra.gmra.mxu1 %vm398_vm3, %v487_v34 }
 0x49d   :  { %2363 = vmatprep.mubr.msk.bf16.mxu1 %vm2712_vm1, %v2711_v15 }
 0x4e9   :  { %v455_v47 = vpop.xlane.xlu1 %454 }
 0x4ea   :  { %2593 = vrcp.f32 %v455_v47 }
 0x4ed   :  { %v458_v49 = vpop.xlane.xlu0 %457  ;;  %v461_v35 = vpop.xlane.xlu1 %460 }
 0x4ee   :  { %2595 = vrcp.f32 %v458_v49 }
 0x4ef   :  { %2597 = vrcp.f32 %v461_v35 }
 0x4f1   :  { %v464_v48 = vpop.xlane.xlu0 %463 }
 0x4f2   :  { %v467_v38 = vpop.xlane.xlu1 %466  ;;  %2599 = vrcp.f32 %v464_v48 }
 0x4f3   :  { %2601 = vrcp.f32 %v467_v38 }
 0x4f5   :  { %v470_v39 = vpop.xlane.xlu0 %469 }
 0x4f6   :  { %v586_v40 = vpop.permute.xlu1 %585  ;;  %2603 = vrcp.f32 %v470_v39  ;;  %v2177_v39 = vld [vmem:[%s3289_s7] ss:$0 sm:$0xff] }
 0x4f7   :  { %2362 = vmatpush3.bf16.msra.mxu1 %v586_v40  ;;  %v2594_v41 = vpop.eup %2593 }
 0x4f8   :  { %2373 = vmatprep.subr.bf16.mxu1 %v2711_v15  ;;  %v481_v44 = vmul.f32 %v2594_v41, %v2578_v12 }
 0x4f9   :  { %v539_v42 = vpop.permute.xlu0 %538 }
 0x4fa   :  { %2356 = vmatpush3.bf16.msra.mxu0 %v539_v42  ;;  %v633_v53 = vpop.permute.xlu1 %632 }
 0x4fb   :  { %v2596_v43 = vpop.eup %2595  ;;  %2367 = vmatprep.subr.bf16.mxu0 %v2711_v15 }
 0x4fc   :  { %v482_v45 = vmul.f32 %v2596_v43, %v2582_v16  ;;  %v2598_v50 = vpop.eup %2597 }
 0x4fd   :  { %v483_v54 = vmul.f32 %v2598_v50, %v2580_v14 }
 0x4fe   :  { %v488_v51 = vpack.c.bf16 %v482_v45, %v481_v44 }
 0x4ff   :  { %v2600_v52 = vpop.eup %2599 }
 0x500   :  { %2358 = vmatmul.mubr.msk.bf16.vlgmr.msra.gmra.mxu0 %vm398_vm3, %v488_v51  ;;  %v484_v55 = vmul.f32 %v2600_v52, %v2584_v19  ;;  %v2602_v56 = vpop.eup %2601 }
 0x501   :  { %2368 = vmatpush3.bf16.msra.mxu0 %v633_v53  ;;  %2369 = vmatprep.mubr.msk.bf16.mxu0 %vm2712_vm1, %v2711_v15  ;;  %v485_v46 = vmul.f32 %v2602_v56, %v2586_v20 }
 0x502   :  { %v489_v57 = vpack.c.bf16 %v484_v55, %v483_v54  ;;  %2381 = vmatprep.subr.bf16.mxu0 %v2711_v15 }
 0x503   :  { %v2604_v58 = vpop.eup %2603 }
 0x504   :  { %2364 = vmatmul.mubr.msk.bf16.vlgmr.msra.gmra.mxu1 %vm398_vm3, %v489_v57  ;;  %v486_v60 = vmul.f32 %v2604_v58, %v2588_v24 }
 0x505   :  { %2377 = vmatprep.mubr.msk.bf16.mxu1 %vm2712_vm1, %v2711_v15  ;;  %2374 = vmatpush3.bf16.msra.mxu1 %v2547_v3 }
 0x506   :  { %v490_v61 = vpack.c.bf16 %v486_v60, %v485_v46  ;;  %2375 = vmatprep.subr.bf16.mxu1 %v2711_v15 }
 0x508   :  { %2370 = vmatmul.mubr.msk.bf16.vlgmr.msra.gmra.mxu0 %vm398_vm3, %v490_v61 }
 0x509   :  { %2385 = vmatprep.mubr.msk.bf16.mxu0 %vm2712_vm1, %v2711_v15  ;;  %2376 = vmatpush3.bf16.msra.mxu1 %v2548_v6 }
 0x50a   :  { %2389 = vmatprep.subr.bf16.mxu1 %v2711_v15 }
 0x55c   :  { %v531_v63 = vpop.f32.mrf.mxu1 }
 0x55e   :  { %v2353_v62 = vpop.f32.mrf.mxu1 }
 0x55f   :  { %v2550_v62 = vld [vmem:[%s3291_s9] sm:$0xff]  }
 0x560   :  { %v534_v1 = vpop.f32.mrf.mxu1 }
 0x562   :  { %v2354_v2 = vpop.f32.mrf.mxu1 }
 0x5c0   :  { %v578_v4 = vpop.f32.mrf.mxu0 }
 0x5c2   :  { %v2359_v5 = vpop.f32.mrf.mxu0 }
 0x5c4   :  { %v581_v7 = vpop.f32.mrf.mxu0  ;;  %v625_v8 = vpop.f32.mrf.mxu1 }
 0x5c5   :  { %v2514_v9 = vpack.i.bf16 %v581_v7, %v578_v4  ;;  %v778_v7 = vld [vmem:[%s3290_s8] sm:$0x3] }
 0x5c6   :  { %v2360_v10 = vpop.f32.mrf.mxu0  ;;  %v2365_v11 = vpop.f32.mrf.mxu1 }
 0x5c7   :  { %2515 = vrot.lane.b32.xlu1 %v2514_v9, %s2718_s28  ;;  %v810_v10 = vrot.slane %v778_v7, %v2849_v25 }
 0x5c8   :  { %v628_v12 = vpop.f32.mrf.mxu1  ;;  %v672_v13 = vpop.f32.mrf.mxu0 }
 0x5c9   :  { %v2519_v14 = vpack.i.bf16 %v628_v12, %v625_v8 }
 0x5ca   :  { %v2366_v16 = vpop.f32.mrf.mxu1  ;;  %v2371_v17 = vpop.f32.mrf.mxu0 }
 0x5cb   :  { %2520 = vrot.lane.b32.xlu0 %v2519_v14, %s2719_s21  ;;  %v816_v14 = vrot.slane %v778_v7, %v2855_v30 }
 0x5cc   :  { %v675_v18 = vpop.f32.mrf.mxu0 }
 0x5cd   :  { %v2524_v19 = vpack.i.bf16 %v675_v18, %v672_v13 }
 0x5ce   :  { %v2372_v20 = vpop.f32.mrf.mxu0 }
 0x5cf   :  { %2525 = vrot.lane.b32.xlu1 %v2524_v19, %s3304_s1  ;;  %v2551_v20 = vld [vmem:[%s3293_s11 + $0x18] sm:$0xff]  }
 0x639   :  { %v2516_v21 = vpop.permute.xlu1 %2515 }
 0x63a   :  { %v2518_v24 = vunpack.i.h.bf16 %v2516_v21  ;;  %v2517_v26 = vunpack.i.l.bf16 %v2516_v21  ;;  %v2552_v21 = vld [vmem:[%s3293_s11 + $0x10] sm:$0xff]  }
 0x63c   :  { %v704_v31 = vsel %vm187_vm2, %v534_v1, %v2518_v24  ;;  %v703_v32 = vsel %vm187_vm2, %v531_v63, %v2517_v26  ;;  %v2554_v24 = vld [vmem:[%s3293_s11] sm:$0xff]  }
 0x63d   :  { %v2521_v22 = vpop.permute.xlu0 %2520  ;;  %v2181_v26 = vld [vmem:[%s3292_s10] ss:$0 sm:$0xff] }
 0x63e   :  { %v2523_v27 = vunpack.i.h.bf16 %v2521_v22  ;;  %v2522_v28 = vunpack.i.l.bf16 %v2521_v22  ;;  %v2553_v22 = vld [vmem:[%s3293_s11 + $0x8] sm:$0xff]  }
 0x640   :  { %v705_v47 = vsel %vm398_vm3, %v703_v32, %v2522_v28  ;;  %v706_v49 = vsel %vm398_vm3, %v704_v31, %v2523_v27 }
 0x641   :  { %v2526_v29 = vpop.permute.xlu1 %2525 }
 0x642   :  { %v2528_v33 = vunpack.i.h.bf16 %v2526_v29  ;;  %v2527_v34 = vunpack.i.l.bf16 %v2526_v29 }
 0x644   :  { %v709_v35 = vsel %vm707_vm4, %v706_v49, %v2528_v33  ;;  %v708_v48 = vsel %vm707_vm4, %v705_v47, %v2527_v34 }
 0x645   :  { %v710_v38 = vpack.c.bf16 %v709_v35, %v708_v48 }
 0x647   :  { %2378 = vmatmul.mubr.msk.bf16.vlgmr.msra.gmra.mxu1 %vm67_vm0, %v710_v38 }
 0x648   :  { %2397 = vmatprep.mubr.msk.bf16.mxu1 %vm2712_vm1, %v2711_v15  ;;  %2390 = vmatpush3.bf16.msra.mxu1 %v2551_v20 }
 0x649   :  { %2391 = vmatprep.subr.bf16.mxu1 %v2711_v15 }
 0x64c   :  { %2392 = vmatpush3.bf16.msra.mxu1 %v2552_v21  ;;  %v990_v21 = vld [vmem:[%s3295_s13] sm:$0x3] }
 0x64d   :  { %2393 = vmatprep.subr.bf16.mxu1 %v2711_v15 }
 0x650   :  { %2394 = vmatpush3.bf16.msra.mxu1 %v2553_v22 }
 0x651   :  { %2395 = vmatprep.subr.bf16.mxu1 %v2711_v15 }
 0x654   :  { %2396 = vmatpush3.bf16.msra.mxu1 %v2554_v24 }
 0x655   :  { %2415 = vmatprep.subr.bf16.mxu1 %v2711_v15 }
 0x707   :  { %v771_v40 = vpop.f32.mrf.mxu1 }
 0x708   :  { %v772_v41 = vadd.f32 %v2177_v39, %v771_v40 }
 0x709   :  { %v2379_v42 = vpop.f32.mrf.mxu1 }
 0x70a   :  { %v779_v43 = vadd.f32 %v772_v41, %v2858_v36 }
 0x70b   :  { %v774_v44 = vpop.f32.mrf.mxu1 }
 0x70c   :  { %v775_v45 = vadd.f32 %v2177_v39, %v774_v44  ;;  %v781_v50 = vsel %vm67_vm0, %v779_v43, 0.0 }
 0x70d   :  { %782 = vadd.xlane.f32.xlu0 %v781_v50  ;;  %v2380_v51 = vpop.f32.mrf.mxu1 }
 0x70e   :  { %v780_v52 = vadd.f32 %v775_v45, %v2860_v37  ;;  %v2549_v37 = vld [vmem:[%s3291_s9 + $0x8] sm:$0xff]  }
 0x70f   :  { %2382 = vmatpush3.bf16.msra.mxu0 %v2549_v37 }
 0x710   :  { %v784_v53 = vsel %vm67_vm0, %v780_v52, 0.0  ;;  %2383 = vmatprep.subr.bf16.mxu0 %v2711_v15 }
 0x711   :  { %785 = vadd.xlane.f32.xlu1 %v784_v53 }
 0x713   :  { %2384 = vmatpush3.bf16.msra.mxu0 %v2550_v62 }
 0x714   :  { %2401 = vmatprep.subr.bf16.mxu0 %v2711_v15 }
 0x796   :  { %v783_v54 = vpop.xlane.xlu0 %782 }
 0x797   :  { %v787_v55 = vmul.f32 0.03125, %v783_v54 }
 0x799   :  { %v789_v56 = vsub.f32 %v779_v43, %v787_v55 }
 0x79a   :  { %v786_v57 = vpop.xlane.xlu1 %785 }
 0x79b   :  { %v788_v58 = vmul.f32 0.03125, %v786_v57  ;;  %v791_v46 = vmul.f32 %v789_v56, %v789_v56 }
 0x79d   :  { %v790_v60 = vsub.f32 %v780_v52, %v788_v58  ;;  %v793_v36 = vsel %vm67_vm0, %v791_v46, 0.0 }
 0x79e   :  { %794 = vadd.xlane.f32.xlu0 %v793_v36 }
 0x79f   :  { %v792_v61 = vmul.f32 %v790_v60, %v790_v60 }
 0x7a1   :  { %v796_v63 = vsel %vm67_vm0, %v792_v61, 0.0 }
 0x7a2   :  { %797 = vadd.xlane.f32.xlu0 %v796_v63 }
 0x827   :  { %v795_v1 = vpop.xlane.xlu0 %794 }
 0x828   :  { %v799_v2 = vmul.f32 0.03125, %v795_v1 }
 0x82a   :  { %v801_v3 = vadd.f32 1e-12, %v799_v2 }
 0x82b   :  { %v798_v4 = vpop.xlane.xlu0 %797 }
 0x82c   :  { %2605 = vrsqrt.f32 %v801_v3  ;;  %v800_v5 = vmul.f32 0.03125, %v798_v4 }
 0x82e   :  { %v802_v6 = vadd.f32 1e-12, %v800_v5 }
 0x830   :  { %2607 = vrsqrt.f32 %v802_v6 }
 0x839   :  { %v2606_v8 = vpop.eup %2605 }
 0x83a   :  { %v805_v9 = vmul.f32 %v2606_v8, %v789_v56  ;;  %v2185_v56 = vld [vmem:[%s3294_s12] ss:$0 sm:$0xff] }
 0x83c   :  { %v811_v13 = vmul.f32 %v810_v10, %v805_v9 }
 0x83d   :  { %v2608_v11 = vpop.eup %2607 }
 0x83e   :  { %v806_v12 = vmul.f32 %v2608_v11, %v790_v60  ;;  %v817_v17 = vadd.f32 %v816_v14, %v811_v13  ;;  %v2556_v13 = vld [vmem:[%s3286_s4 + $0x10] sm:$0xff]  }
 0x840   :  { %v812_v16 = vmul.f32 %v810_v10, %v806_v12  ;;  %v2555_v12 = vld [vmem:[%s3286_s4 + $0x18] sm:$0xff]  }
 0x842   :  { %v818_v18 = vadd.f32 %v816_v14, %v812_v16 }
 0x844   :  { %v819_v19 = vpack.c.bf16 %v818_v18, %v817_v17 }
 0x846   :  { %2386 = vmatmul.mubr.msk.bf16.vlgmr.msra.gmra.mxu0 %vm67_vm0, %v819_v19 }
 0x847   :  { %2405 = vmatprep.mubr.msk.bf16.mxu0 %vm2712_vm1, %v2711_v15  ;;  %2402 = vmatpush3.bf16.msra.mxu0 %v2555_v12 }
 0x848   :  { %2403 = vmatprep.subr.bf16.mxu0 %v2711_v15 }
 0x84b   :  { %2404 = vmatpush3.bf16.msra.mxu0 %v2556_v13 }
 0x84c   :  { %2409 = vmatprep.subr.bf16.mxu0 %v2711_v15 }
 0x906   :  { %v880_v27 = vpop.f32.mrf.mxu0 }
 0x907   :  { %v881_v28 = vadd.f32 %v2181_v26, %v880_v27 }
 0x908   :  { %v2387_v29 = vpop.f32.mrf.mxu0 }
 0x909   :  { %v889_v31 = vmul.f32 0.044715, %v881_v28  ;;  %v887_v50 = vmul.f32 0.5, %v881_v28 }
 0x90a   :  { %v883_v32 = vpop.f32.mrf.mxu0 }
 0x90b   :  { %v891_v33 = vmul.f32 %v889_v31, %v881_v28  ;;  %v884_v34 = vadd.f32 %v2181_v26, %v883_v32  ;;  %v1022_v26 = vrot.slane %v990_v21, %v2849_v25  ;;  %v1028_v31 = vrot.slane %v990_v21, %v2855_v30 }
 0x90c   :  { %v2388_v47 = vpop.f32.mrf.mxu0 }
 0x90d   :  { %v893_v49 = vmul.f32 %v891_v33, %v881_v28  ;;  %v890_v35 = vmul.f32 0.044715, %v884_v34  ;;  %v888_v51 = vmul.f32 0.5, %v884_v34 }
 0x90f   :  { %v895_v48 = vadd.f32 %v893_v49, %v881_v28  ;;  %v892_v38 = vmul.f32 %v890_v35, %v884_v34  ;;  %v2196_v35 = vld [vmem:[%s3287_s5 + $0x1] ss:$0 sm:$0xff] }
 0x911   :  { %v897_v39 = vmul.f32 0.7978846, %v895_v48  ;;  %v894_v40 = vmul.f32 %v892_v38, %v884_v34 }
 0x913   :  { %2609 = vtanh.f32 %v897_v39  ;;  %v896_v41 = vadd.f32 %v894_v40, %v884_v34 }
 0x915   :  { %v898_v42 = vmul.f32 0.7978846, %v896_v41 }
 0x917   :  { %2611 = vtanh.f32 %v898_v42 }
 0x920   :  { %v2610_v43 = vpop.eup %2609 }
 0x921   :  { %v901_v44 = vadd.f32 1.0, %v2610_v43 }
 0x923   :  { %v903_v53 = vmul.f32 %v901_v44, %v887_v50 }
 0x924   :  { %v2612_v45 = vpop.eup %2611 }
 0x925   :  { %v902_v52 = vadd.f32 1.0, %v2612_v45 }
 0x927   :  { %v904_v54 = vmul.f32 %v902_v52, %v888_v51 }
 0x929   :  { %v905_v55 = vpack.c.bf16 %v904_v54, %v903_v53 }
 0x92b   :  { %2398 = vmatmul.mubr.msk.bf16.vlgmr.msra.gmra.mxu1 %vm945_vm5, %v905_v55 }
 0x92c   :  { %2417 = vmatprep.mubr.msk.bf16.mxu1 %vm2712_vm1, %v2711_v15 }
 0x9eb   :  { %v983_v57 = vpop.f32.mrf.mxu1 }
 0x9ec   :  { %v984_v58 = vadd.f32 %v2185_v56, %v983_v57 }
 0x9ed   :  { %v2399_v46 = vpop.f32.mrf.mxu1 }
 0x9ee   :  { %v991_v60 = vadd.f32 %v984_v58, %v817_v17 }
 0x9ef   :  { %v986_v36 = vpop.f32.mrf.mxu1 }
 0x9f0   :  { %v987_v61 = vadd.f32 %v2185_v56, %v986_v36  ;;  %v993_v63 = vsel %vm67_vm0, %v991_v60, 0.0 }
 0x9f1   :  { %994 = vadd.xlane.f32.xlu0 %v993_v63  ;;  %v2400_v37 = vpop.f32.mrf.mxu1 }
 0x9f2   :  { %v992_v62 = vadd.f32 %v987_v61, %v818_v18 }
 0x9f4   :  { %v996_v1 = vsel %vm67_vm0, %v992_v62, 0.0 }
 0x9f5   :  { %997 = vadd.xlane.f32.xlu1 %v996_v1 }
 0xa7a   :  { %v995_v2 = vpop.xlane.xlu0 %994 }
 0xa7b   :  { %v999_v3 = vmul.f32 0.03125, %v995_v2 }
 0xa7d   :  { %v1001_v4 = vsub.f32 %v991_v60, %v999_v3 }
 0xa7e   :  { %v998_v5 = vpop.xlane.xlu1 %997 }
 0xa7f   :  { %v1000_v6 = vmul.f32 0.03125, %v998_v5  ;;  %v1003_v7 = vmul.f32 %v1001_v4, %v1001_v4 }
 0xa81   :  { %v1002_v8 = vsub.f32 %v992_v62, %v1000_v6  ;;  %v1005_v9 = vsel %vm67_vm0, %v1003_v7, 0.0 }
 0xa82   :  { %1006 = vadd.xlane.f32.xlu0 %v1005_v9 }
 0xa83   :  { %v1004_v10 = vmul.f32 %v1002_v8, %v1002_v8 }
 0xa85   :  { %v1008_v11 = vsel %vm67_vm0, %v1004_v10, 0.0 }
 0xa86   :  { %1009 = vadd.xlane.f32.xlu1 %v1008_v11 }
 0xb0b   :  { %v1007_v14 = vpop.xlane.xlu0 %1006 }
 0xb0c   :  { %v1011_v16 = vmul.f32 0.03125, %v1007_v14 }
 0xb0e   :  { %v1013_v17 = vadd.f32 1e-12, %v1011_v16 }
 0xb0f   :  { %v1010_v18 = vpop.xlane.xlu1 %1009 }
 0xb10   :  { %2613 = vrsqrt.f32 %v1013_v17  ;;  %v1012_v19 = vmul.f32 0.03125, %v1010_v18 }
 0xb12   :  { %v1014_v20 = vadd.f32 1e-12, %v1012_v19 }
 0xb14   :  { %2615 = vrsqrt.f32 %v1014_v20 }
 0xb1d   :  { %v2614_v22 = vpop.eup %2613 }
 0xb1e   :  { %v1017_v24 = vmul.f32 %v2614_v22, %v1001_v4 }
 0xb20   :  { %v1023_v29 = vmul.f32 %v1022_v26, %v1017_v24 }
 0xb21   :  { %v2616_v27 = vpop.eup %2615 }
 0xb22   :  { %v1018_v28 = vmul.f32 %v2616_v27, %v1002_v8  ;;  %v3061_v33 = vadd.f32 %v1028_v31, %v1023_v29 }
 0xb24   :  { %v1024_v32 = vmul.f32 %v1022_v26, %v1018_v28 }
 0xb26   :  { %v3063_v34 = vadd.f32 %v1028_v31, %v1024_v32 }
 0xb28   :  { %v1031_v47 = vpack.c.bf16 %v3063_v34, %v3061_v33 }
 0xb2a   :  { %2406 = vmatmul.mubr.msk.bf16.vlgmr.msra.gmra.mxu0 %vm67_vm0, %v1031_v47 }
 0xb2b   :  { %2411 = vmatprep.mubr.msk.bf16.mxu0 %vm2712_vm1, %v2711_v15 }
 0xbea   :  { %v1094_v49 = vpop.f32.mrf.mxu0 }
 0xbeb   :  { %v1095_v39 = vadd.f32 %v2196_v35, %v1094_v49 }
 0xbec   :  { %v2407_v48 = vpop.f32.mrf.mxu0 }
 0xbee   :  { %v1097_v38 = vpop.f32.mrf.mxu0 }
 0xbef   :  { %v1098_v40 = vadd.f32 %v2196_v35, %v1097_v38 }
 0xbf0   :  { %v2408_v41 = vpop.f32.mrf.mxu0 }
 0xbf1   :  { %v3073_v42 = vpack.c.bf16 %v1098_v40, %v1095_v39 }
 0xbf3   :  { %1105 = vrot.lane.b32.xlu1 %v3073_v42, %s2713_s29  ;;  %1103 = vrot.lane.b32.xlu0 %v3073_v42, %s2714_s0 }
 0xbf7   :  { %1107 = vrot.lane.b32.xlu1 %v3073_v42, %s2715_s30 }
 0xbfb   :  { %1109 = vrot.lane.b32.xlu1 %v3073_v42, %s2716_s20 }
 0xc65   :  { %v3083_v43 = vpop.permute.xlu1 %1105  ;;  %v3085_v44 = vpop.permute.xlu0 %1103 }
 0xc66   :  { %1207 = vrot.lane.b32.xlu1 %v3083_v43, %s2716_s20  ;;  %1158 = vrot.lane.b32.xlu0 %v3085_v44, %s2716_s20 }
 0xc69   :  { %v3091_v45 = vpop.permute.xlu1 %1107 }
 0xc6a   :  { %1256 = vrot.lane.b32.xlu0 %v3091_v45, %s2716_s20 }
 0xc6d   :  { %v1110_v50 = vpop.permute.xlu1 %1109 }
 0xc6e   :  { %v1115_v51 = vsel %vm187_vm2, %v1110_v50, 0 }
 0xc6f   :  { %2410 = vmatpush3.bf16.xpose.msra.mxu0 %v1115_v51 }
 0xc70   :  { %2421 = vmatprep.subr.bf16.mxu0 %v2711_v15 }
 0xc76   :  { %2412 = vmatmul.mubr.msk.bf16.vlgmr.msra.gmra.mxu0 %vm187_vm2, %v3073_v42 }
 0xc77   :  { %2423 = vmatprep.mubr.msk.bf16.mxu0 %vm2712_vm1, %v2711_v15 }
 0xcd8   :  { %v1208_v52 = vpop.permute.xlu1 %1207  ;;  %v1159_v53 = vpop.permute.xlu0 %1158 }
 0xcd9   :  { %v1213_v54 = vsel %vm187_vm2, %v1208_v52, 0  ;;  %v1164_v55 = vsel %vm187_vm2, %v1159_v53, 0 }
 0xcda   :  { %2416 = vmatpush3.bf16.xpose.msra.mxu1 %v1164_v55  ;;  %2422 = vmatpush3.bf16.xpose.msra.mxu0 %v1213_v54 }
 0xcdb   :  { %2427 = vmatprep.subr.bf16.mxu1 %v2711_v15  ;;  %2433 = vmatprep.subr.bf16.mxu0 %v2711_v15 }
 0xcdc   :  { %v1257_v56 = vpop.permute.xlu0 %1256 }
 0xcdd   :  { %v1262_v57 = vsel %vm187_vm2, %v1257_v56, 0 }
 0xce1   :  { %2418 = vmatmul.mubr.msk.bf16.vlgmr.msra.gmra.mxu1 %vm187_vm2, %v3085_v44  ;;  %2424 = vmatmul.mubr.msk.bf16.vlgmr.msra.gmra.mxu0 %vm187_vm2, %v3083_v43 }
 0xce2   :  { %2428 = vmatpush3.bf16.xpose.msra.mxu1 %v1262_v57  ;;  %2429 = vmatprep.mubr.msk.bf16.mxu1 %vm2712_vm1, %v2711_v15 }
 0xce3   :  { %2435 = vmatprep.mubr.msk.bf16.mxu0 %vm2712_vm1, %v2711_v15  ;;  %2439 = vmatprep.subr.bf16.mxu1 %v2711_v15 }
 0xce9   :  { %2430 = vmatmul.mubr.msk.bf16.vlgmr.msra.gmra.mxu1 %vm187_vm2, %v3091_v45 }
 0xcea   :  { %2441 = vmatprep.mubr.msk.bf16.mxu1 %vm2712_vm1, %v2711_v15 }
 0xd36   :  { %v1151_v58 = vpop.f32.mrf.mxu0 }
 0xd37   :  { %v1305_v46 = vmul.f32 0.35355338, %v1151_v58 }
 0xd38   :  { %v2413_v60 = vpop.f32.mrf.mxu0 }
 0xd39   :  { %v1313_v36 = vadd.f32 %v1305_v46, %v2919_v59 }
 0xd3a   :  { %v1154_v61 = vpop.f32.mrf.mxu0 }
 0xd3b   :  { %v1306_v63 = vmul.f32 0.35355338, %v1154_v61  ;;  %v1321_v37 = vsel %vm398_vm3, %v1313_v36, -inf }
 0xd3c   :  { %1322 = vmax.xlane.f32.xlu1 %v1321_v37  ;;  %v2414_v62 = vpop.f32.mrf.mxu0 }
 0xd3d   :  { %v1314_v1 = vadd.f32 %v1306_v63, %v2925_v0 }
 0xd3f   :  { %v1324_v2 = vsel %vm398_vm3, %v1314_v1, -inf }
 0xd40   :  { %1325 = vmax.xlane.f32.xlu0 %v1324_v2 }
 0xda1   :  { %v1200_v3 = vpop.f32.mrf.mxu1  ;;  %v1249_v4 = vpop.f32.mrf.mxu0 }
 0xda2   :  { %v1307_v5 = vmul.f32 0.35355338, %v1200_v3  ;;  %v1309_v6 = vmul.f32 0.35355338, %v1249_v4 }
 0xda3   :  { %v2419_v7 = vpop.f32.mrf.mxu1  ;;  %v2425_v8 = vpop.f32.mrf.mxu0 }
 0xda4   :  { %v1315_v9 = vadd.f32 %v1307_v5, %v2919_v59  ;;  %v1317_v10 = vadd.f32 %v1309_v6, %v2919_v59 }
 0xda5   :  { %v1203_v11 = vpop.f32.mrf.mxu1  ;;  %v1252_v12 = vpop.f32.mrf.mxu0 }
 0xda6   :  { %v1308_v13 = vmul.f32 0.35355338, %v1203_v11  ;;  %v1310_v14 = vmul.f32 0.35355338, %v1252_v12  ;;  %v1327_v16 = vsel %vm398_vm3, %v1315_v9, -inf  ;;  %v1333_v17 = vsel %vm398_vm3, %v1317_v10, -inf }
 0xda7   :  { %v2420_v18 = vpop.f32.mrf.mxu1  ;;  %1328 = vmax.xlane.f32.xlu0 %v1327_v16  ;;  %1334 = vmax.xlane.f32.xlu1 %v1333_v17  ;;  %v2426_v19 = vpop.f32.mrf.mxu0 }
 0xda8   :  { %v1316_v20 = vadd.f32 %v1308_v13, %v2925_v0  ;;  %v1318_v26 = vadd.f32 %v1310_v14, %v2925_v0 }
 0xda9   :  { %v1298_v21 = vpop.f32.mrf.mxu1 }
 0xdaa   :  { %v1311_v22 = vmul.f32 0.35355338, %v1298_v21  ;;  %v1330_v24 = vsel %vm398_vm3, %v1316_v20, -inf  ;;  %v1336_v47 = vsel %vm398_vm3, %v1318_v26, -inf }
 0xdab   :  { %v2431_v27 = vpop.f32.mrf.mxu1  ;;  %1331 = vmax.xlane.f32.xlu0 %v1330_v24 }
 0xdac   :  { %v1319_v28 = vadd.f32 %v1311_v22, %v2919_v59 }
 0xdad   :  { %v1301_v29 = vpop.f32.mrf.mxu1 }
 0xdae   :  { %v1312_v31 = vmul.f32 0.35355338, %v1301_v29  ;;  %v1339_v32 = vsel %vm398_vm3, %v1319_v28, -inf }
 0xdaf   :  { %v2432_v49 = vpop.f32.mrf.mxu1  ;;  %1340 = vmax.xlane.f32.xlu1 %v1339_v32  ;;  %1337 = vmax.xlane.f32.xlu0 %v1336_v47 }
 0xdb0   :  { %v1320_v35 = vadd.f32 %v1312_v31, %v2925_v0 }
 0xdb2   :  { %v1342_v48 = vsel %vm398_vm3, %v1320_v35, -inf }
 0xdb3   :  { %1343 = vmax.xlane.f32.xlu0 %v1342_v48 }
 0xdc0   :  { %1413 = vrot.lane.b32.xlu1 %v3073_v42, %s2717_s24 }
 0xdc5   :  { %v1323_v38 = vpop.xlane.xlu1 %1322 }
 0xdc6   :  { %v1345_v40 = vsub.f32 %v1313_v36, %v1323_v38 }
 0xdc8   :  { %v1353_v50 = vmul.f32 1.442695, %v1345_v40 }
 0xdc9   :  { %v1326_v39 = vpop.xlane.xlu0 %1325 }
 0xdca   :  { %v1346_v59 = vsub.f32 %v1314_v1, %v1326_v39 }
 0xdcc   :  { %v1355_v41 = vmul.f32 1.442695, %v1346_v59 }
 0xdce   :  { %2617 = vpow2.f32 %v1355_v41 }
 0xdcf   :  { %2619 = vpow2.f32 %v1353_v50 }
 0xddb   :  { %v2618_v51 = vpop.eup %2617 }
 0xddc   :  { %v1372_v52 = vsel %vm398_vm3, %v2618_v51, 0.0  ;;  %v2620_v53 = vpop.eup %2619 }
 0xddd   :  { %1373 = vadd.xlane.f32.xlu0 %v1372_v52  ;;  %v1369_v0 = vsel %vm398_vm3, %v2620_v53, 0.0 }
 0xde4   :  { %1370 = vadd.xlane.f32.xlu1 %v1369_v0 }
 0xe30   :  { %v1329_v54 = vpop.xlane.xlu0 %1328  ;;  %v1335_v55 = vpop.xlane.xlu1 %1334 }
 0xe31   :  { %v1347_v56 = vsub.f32 %v1315_v9, %v1329_v54  ;;  %v1349_v42 = vsub.f32 %v1317_v10, %v1335_v55 }
 0xe33   :  { %v1357_v57 = vmul.f32 1.442695, %v1347_v56  ;;  %v1361_v58 = vmul.f32 1.442695, %v1349_v42 }
 0xe34   :  { %v1332_v46 = vpop.xlane.xlu0 %1331 }
 0xe35   :  { %2621 = vpow2.f32 %v1357_v57  ;;  %v1348_v60 = vsub.f32 %v1316_v20, %v1332_v46 }
 0xe36   :  { %2623 = vpow2.f32 %v1361_v58 }
 0xe37   :  { %v1359_v36 = vmul.f32 1.442695, %v1348_v60 }
 0xe38   :  { %v1341_v61 = vpop.xlane.xlu1 %1340  ;;  %v1338_v63 = vpop.xlane.xlu0 %1337 }
 0xe39   :  { %2625 = vpow2.f32 %v1359_v36  ;;  %v1351_v37 = vsub.f32 %v1319_v28, %v1341_v61  ;;  %v1350_v62 = vsub.f32 %v1318_v26, %v1338_v63  ;;  %v2557_v36 = vld [vmem:[%s3288_s6 + $0x18] sm:$0xff]  }
 0xe3b   :  { %v1365_v1 = vmul.f32 1.442695, %v1351_v37  ;;  %v1363_v2 = vmul.f32 1.442695, %v1350_v62  ;;  %v2558_v37 = vld [vmem:[%s3288_s6 + $0x10] sm:$0xff]   ;;  %s3312_s6 = smov 24  }
 0xe3c   :  { %v1414_v3 = vpop.permute.xlu1 %1413  ;;  %v1344_v4 = vpop.xlane.xlu0 %1343 }
 0xe3d   :  { %2627 = vpow2.f32 %v1365_v1  ;;  %v1352_v5 = vsub.f32 %v1320_v35, %v1344_v4  ;;  %2434 = vmatpush3.bf16.msra.mxu0 %v1414_v3 }
 0xe3e   :  { %2629 = vpow2.f32 %v1363_v2  ;;  %2445 = vmatprep.subr.bf16.mxu0 %v2711_v15 }
 0xe3f   :  { %v1367_v6 = vmul.f32 1.442695, %v1352_v5 }
 0xe41   :  { %2631 = vpow2.f32 %v1367_v6 }
 0xe42   :  { %v2622_v7 = vpop.eup %2621 }
 0xe43   :  { %v1375_v8 = vsel %vm398_vm3, %v2622_v7, 0.0  ;;  %v2624_v9 = vpop.eup %2623 }
 0xe44   :  { %1376 = vadd.xlane.f32.xlu1 %v1375_v8  ;;  %v1381_v11 = vsel %vm398_vm3, %v2624_v9, 0.0 }
 0xe46   :  { %v2626_v10 = vpop.eup %2625 }
 0xe47   :  { %v1378_v12 = vsel %vm398_vm3, %v2626_v10, 0.0 }
 0xe48   :  { %1382 = vadd.xlane.f32.xlu1 %v1381_v11  ;;  %1379 = vadd.xlane.f32.xlu0 %v1378_v12 }
 0xe4a   :  { %v2628_v13 = vpop.eup %2627 }
 0xe4b   :  { %v2630_v14 = vpop.eup %2629  ;;  %v1387_v16 = vsel %vm398_vm3, %v2628_v13, 0.0 }
 0xe4c   :  { %1388 = vadd.xlane.f32.xlu1 %v1387_v16  ;;  %v1384_v17 = vsel %vm398_vm3, %v2630_v14, 0.0 }
 0xe4d   :  { %1385 = vadd.xlane.f32.xlu0 %v1384_v17 }
 0xe4e   :  { %v2632_v18 = vpop.eup %2631 }
 0xe4f   :  { %v1390_v19 = vsel %vm398_vm3, %v2632_v18, 0.0 }
 0xe51   :  { %1391 = vadd.xlane.f32.xlu0 %v1390_v19 }
 0xe5d   :  { %1507 = vrot.lane.b32.xlu1 %v3083_v43, %s2717_s24 }
 0xe61   :  { %1554 = vrot.lane.b32.xlu1 %v3091_v45, %s2717_s24 }
 0xe66   :  { %v1374_v20 = vpop.xlane.xlu0 %1373 }
 0xe67   :  { %1460 = vrot.lane.b32.xlu0 %v3085_v44, %s2717_s24  ;;  %2633 = vrcp.f32 %v1374_v20 }
 0xe6d   :  { %v1371_v21 = vpop.xlane.xlu1 %1370 }
 0xe6e   :  { %2635 = vrcp.f32 %v1371_v21 }
 0xe74   :  { %v2634_v22 = vpop.eup %2633 }
 0xe75   :  { %v1402_v27 = vmul.f32 %v2634_v22, %v2618_v51 }
 0xe7b   :  { %v2636_v24 = vpop.eup %2635 }
 0xe7c   :  { %v1401_v26 = vmul.f32 %v2636_v24, %v2620_v53 }
 0xe7e   :  { %v1409_v28 = vpack.c.bf16 %v1402_v27, %v1401_v26 }
 0xe80   :  { %2436 = vmatmul.mubr.msk.bf16.vlgmr.msra.gmra.mxu0 %vm398_vm3, %v1409_v28 }
 0xe81   :  { %2447 = vmatprep.mubr.msk.bf16.mxu0 %vm2712_vm1, %v2711_v15 }
 0xecd   :  { %v1377_v43 = vpop.xlane.xlu1 %1376 }
 0xece   :  { %2637 = vrcp.f32 %v1377_v43 }
 0xed1   :  { %v1383_v45 = vpop.xlane.xlu1 %1382  ;;  %v1380_v29 = vpop.xlane.xlu0 %1379 }
 0xed2   :  { %2639 = vrcp.f32 %v1380_v29 }
 0xed3   :  { %2641 = vrcp.f32 %v1383_v45 }
 0xed5   :  { %v1389_v44 = vpop.xlane.xlu1 %1388 }
 0xed6   :  { %v1386_v31 = vpop.xlane.xlu0 %1385 }
 0xed7   :  { %2643 = vrcp.f32 %v1386_v31 }
 0xed8   :  { %2645 = vrcp.f32 %v1389_v44  ;;  %v2213_v44 = vld [vmem:[%s3289_s7 + $0x1] ss:$0 sm:$0xff] }
 0xed9   :  { %v1508_v32 = vpop.permute.xlu1 %1507 }
 0xeda   :  { %v1392_v47 = vpop.xlane.xlu0 %1391  ;;  %2446 = vmatpush3.bf16.msra.mxu0 %v1508_v32 }
 0xedb   :  { %2647 = vrcp.f32 %v1392_v47  ;;  %2457 = vmatprep.subr.bf16.mxu0 %v2711_v15  ;;  %v2638_v49 = vpop.eup %2637 }
 0xedc   :  { %v1403_v38 = vmul.f32 %v2638_v49, %v2622_v7 }
 0xedd   :  { %v1555_v50 = vpop.permute.xlu1 %1554 }
 0xede   :  { %v1461_v35 = vpop.permute.xlu0 %1460 }
 0xedf   :  { %2440 = vmatpush3.bf16.msra.mxu1 %v1461_v35  ;;  %v2640_v48 = vpop.eup %2639 }
 0xee0   :  { %2451 = vmatprep.subr.bf16.mxu1 %v2711_v15  ;;  %v1404_v39 = vmul.f32 %v2640_v48, %v2626_v10  ;;  %v2642_v59 = vpop.eup %2641 }
 0xee1   :  { %v1405_v51 = vmul.f32 %v2642_v59, %v2624_v9 }
 0xee2   :  { %v1410_v40 = vpack.c.bf16 %v1404_v39, %v1403_v38 }
 0xee4   :  { %v2644_v41 = vpop.eup %2643  ;;  %2442 = vmatmul.mubr.msk.bf16.vlgmr.msra.gmra.mxu1 %vm398_vm3, %v1410_v40 }
 0xee5   :  { %v1406_v52 = vmul.f32 %v2644_v41, %v2630_v14  ;;  %v2646_v53 = vpop.eup %2645  ;;  %2452 = vmatpush3.bf16.msra.mxu1 %v1555_v50  ;;  %2453 = vmatprep.mubr.msk.bf16.mxu1 %vm2712_vm1, %v2711_v15 }
 0xee6   :  { %2465 = vmatprep.subr.bf16.mxu1 %v2711_v15  ;;  %v1407_v55 = vmul.f32 %v2646_v53, %v2628_v13 }
 0xee7   :  { %v1411_v0 = vpack.c.bf16 %v1406_v52, %v1405_v51 }
 0xee8   :  { %v2648_v54 = vpop.eup %2647 }
 0xee9   :  { %2448 = vmatmul.mubr.msk.bf16.vlgmr.msra.gmra.mxu0 %vm398_vm3, %v1411_v0  ;;  %v1408_v56 = vmul.f32 %v2648_v54, %v2632_v18 }
 0xeea   :  { %2461 = vmatprep.mubr.msk.bf16.mxu0 %vm2712_vm1, %v2711_v15  ;;  %2458 = vmatpush3.bf16.msra.mxu0 %v2557_v36 }
 0xeeb   :  { %v1412_v42 = vpack.c.bf16 %v1408_v56, %v1407_v55  ;;  %2459 = vmatprep.subr.bf16.mxu0 %v2711_v15 }
 0xeed   :  { %2454 = vmatmul.mubr.msk.bf16.vlgmr.msra.gmra.mxu1 %vm398_vm3, %v1412_v42  ;;  %v2560_v42 = vld [vmem:[%s3291_s9 + $0x10] sm:$0xff]  }
 0xeee   :  { %2469 = vmatprep.mubr.msk.bf16.mxu1 %vm2712_vm1, %v2711_v15  ;;  %2460 = vmatpush3.bf16.msra.mxu0 %v2558_v37 }
 0xeef   :  { %2473 = vmatprep.subr.bf16.mxu0 %v2711_v15 }
 0xf40   :  { %v1453_v57 = vpop.f32.mrf.mxu0 }
 0xf42   :  { %v2437_v58 = vpop.f32.mrf.mxu0 }
 0xf44   :  { %v1456_v46 = vpop.f32.mrf.mxu0 }
 0xf46   :  { %v2438_v60 = vpop.f32.mrf.mxu0 }
 0xfa4   :  { %v1500_v61 = vpop.f32.mrf.mxu1 }
 0xfa6   :  { %v2443_v63 = vpop.f32.mrf.mxu1 }
 0xfa7   :  { %v2217_v63 = vld [vmem:[%s3290_s8 + $0x2] sm:$0x3] }
 0xfa8   :  { %v1503_v62 = vpop.f32.mrf.mxu1 }
 0xfa9   :  { %v1547_v1 = vpop.f32.mrf.mxu0  ;;  %v2529_v2 = vpack.i.bf16 %v1503_v62, %v1500_v61 }
 0xfaa   :  { %v2444_v3 = vpop.f32.mrf.mxu1 }
 0xfab   :  { %v2449_v4 = vpop.f32.mrf.mxu0  ;;  %2530 = vrot.lane.b32.xlu1 %v2529_v2, %s2718_s28 }
 0xfad   :  { %v1550_v5 = vpop.f32.mrf.mxu0  ;;  %v1594_v6 = vpop.f32.mrf.mxu1 }
 0xfae   :  { %v2534_v7 = vpack.i.bf16 %v1550_v5, %v1547_v1  ;;  %v1734_v1 = vrot.slane %v2217_v63, %v2849_v25  ;;  %v1740_v5 = vrot.slane %v2217_v63, %v2855_v30 }
 0xfaf   :  { %v2450_v8 = vpop.f32.mrf.mxu0  ;;  %v2455_v9 = vpop.f32.mrf.mxu1 }
 0xfb0   :  { %2535 = vrot.lane.b32.xlu0 %v2534_v7, %s2719_s21 }
 0xfb1   :  { %v1597_v10 = vpop.f32.mrf.mxu1 }
 0xfb2   :  { %v2539_v11 = vpack.i.bf16 %v1597_v10, %v1594_v6  ;;  %v2561_v10 = vld [vmem:[%s3293_s11 + $0x38] sm:$0xff]  }
 0xfb3   :  { %v2456_v12 = vpop.f32.mrf.mxu1 }
 0xfb4   :  { %2540 = vrot.lane.b32.xlu1 %v2539_v11, %s3312_s6  ;;  %v2562_v11 = vld [vmem:[%s3293_s11 + $0x30] sm:$0xff]   ;;  %v2563_v12 = vld [vmem:[%s3293_s11 + $0x28] sm:$0xff]  }
0x101d   :  { %v2531_v13 = vpop.permute.xlu1 %2530 }
0x101e   :  { %v2533_v16 = vunpack.i.h.bf16 %v2531_v13  ;;  %v2532_v17 = vunpack.i.l.bf16 %v2531_v13  ;;  %v2564_v13 = vld [vmem:[%s3293_s11 + $0x20] sm:$0xff]  }
0x1020   :  { %v1625_v21 = vsel %vm187_vm2, %v1453_v57, %v2532_v17  ;;  %v1626_v22 = vsel %vm187_vm2, %v1456_v46, %v2533_v16 }
0x1022   :  { %v2536_v14 = vpop.permute.xlu0 %2535 }
0x1023   :  { %v2538_v18 = vunpack.i.h.bf16 %v2536_v14  ;;  %v2537_v19 = vunpack.i.l.bf16 %v2536_v14  ;;  %v2223_v14 = vld [vmem:[%s3292_s10 + $0x1] ss:$0 sm:$0xff] }
0x1025   :  { %v1628_v27 = vsel %vm398_vm3, %v1626_v22, %v2538_v18  ;;  %v1627_v28 = vsel %vm398_vm3, %v1625_v21, %v2537_v19 }
0x1026   :  { %v2541_v20 = vpop.permute.xlu1 %2540 }
0x1027   :  { %v2543_v24 = vunpack.i.h.bf16 %v2541_v20  ;;  %v2542_v26 = vunpack.i.l.bf16 %v2541_v20 }
0x1029   :  { %v1629_v43 = vsel %vm707_vm4, %v1627_v28, %v2542_v26  ;;  %v1630_v45 = vsel %vm707_vm4, %v1628_v27, %v2543_v24 }
0x102a   :  { %v1631_v29 = vpack.c.bf16 %v1630_v45, %v1629_v43 }
0x102c   :  { %2462 = vmatmul.mubr.msk.bf16.vlgmr.msra.gmra.mxu0 %vm67_vm0, %v1631_v29 }
0x102d   :  { %2481 = vmatprep.mubr.msk.bf16.mxu0 %vm2712_vm1, %v2711_v15  ;;  %2474 = vmatpush3.bf16.msra.mxu0 %v2561_v10  ;;  %v2242_v10 = vld [vmem:[%s3295_s13 + $0x2] sm:$0x3] }
0x102e   :  { %2475 = vmatprep.subr.bf16.mxu0 %v2711_v15 }
0x1031   :  { %2476 = vmatpush3.bf16.msra.mxu0 %v2562_v11  ;;  %v1950_v11 = vrot.slane %v2242_v10, %v2849_v25  ;;  %v2567_v25 = vld [vmem:[%s3298_s16 + $0x8] sm:$0xff]  }
0x1032   :  { %2477 = vmatprep.subr.bf16.mxu0 %v2711_v15 }
0x1035   :  { %2478 = vmatpush3.bf16.msra.mxu0 %v2563_v12 }
0x1036   :  { %2479 = vmatprep.subr.bf16.mxu0 %v2711_v15 }
0x1039   :  { %2480 = vmatpush3.bf16.msra.mxu0 %v2564_v13 }
0x10ec   :  { %v1694_v31 = vpop.f32.mrf.mxu0 }
0x10ed   :  { %v1695_v32 = vadd.f32 %v2213_v44, %v1694_v31 }
0x10ee   :  { %v2463_v47 = vpop.f32.mrf.mxu0 }
0x10ef   :  { %v1703_v49 = vadd.f32 %v1695_v32, %v3061_v33 }
0x10f0   :  { %v1697_v35 = vpop.f32.mrf.mxu0 }
0x10f1   :  { %v1698_v48 = vadd.f32 %v2213_v44, %v1697_v35  ;;  %v1705_v38 = vsel %vm67_vm0, %v1703_v49, 0.0 }
0x10f2   :  { %1706 = vadd.xlane.f32.xlu0 %v1705_v38  ;;  %v2464_v39 = vpop.f32.mrf.mxu0 }
0x10f3   :  { %v1704_v59 = vadd.f32 %v1698_v48, %v3063_v34  ;;  %v2559_v34 = vld [vmem:[%s3291_s9 + $0x18] sm:$0xff]   ;;  %s3313_s9 = sld [smem:[#allocation10_spill]] }
0x10f4   :  { %2466 = vmatpush3.bf16.msra.mxu1 %v2559_v34 }
0x10f5   :  { %v1708_v40 = vsel %vm67_vm0, %v1704_v59, 0.0  ;;  %2467 = vmatprep.subr.bf16.mxu1 %v2711_v15 }
0x10f6   :  { %1709 = vadd.xlane.f32.xlu1 %v1708_v40 }
0x10f8   :  { %2468 = vmatpush3.bf16.msra.mxu1 %v2560_v42 }
0x10f9   :  { %2485 = vmatprep.subr.bf16.mxu1 %v2711_v15 }
0x117b   :  { %v1707_v41 = vpop.xlane.xlu0 %1706 }
0x117c   :  { %v1711_v50 = vmul.f32 0.03125, %v1707_v41  ;;  %v2236_v41 = vld [vmem:[%s3294_s12 + $0x1] ss:$0 sm:$0xff] }
0x117e   :  { %v1713_v51 = vsub.f32 %v1703_v49, %v1711_v50 }
0x117f   :  { %v1710_v52 = vpop.xlane.xlu1 %1709 }
0x1180   :  { %v1712_v53 = vmul.f32 0.03125, %v1710_v52  ;;  %v1715_v0 = vmul.f32 %v1713_v51, %v1713_v51 }
0x1182   :  { %v1714_v54 = vsub.f32 %v1704_v59, %v1712_v53  ;;  %v1717_v33 = vsel %vm67_vm0, %v1715_v0, 0.0 }
0x1183   :  { %1718 = vadd.xlane.f32.xlu0 %v1717_v33 }
0x1184   :  { %v1716_v55 = vmul.f32 %v1714_v54, %v1714_v54 }
0x1186   :  { %v1720_v56 = vsel %vm67_vm0, %v1716_v55, 0.0 }
0x1187   :  { %1721 = vadd.xlane.f32.xlu0 %v1720_v56 }
0x120c   :  { %v1719_v57 = vpop.xlane.xlu0 %1718 }
0x120d   :  { %v1723_v58 = vmul.f32 0.03125, %v1719_v57 }
0x120f   :  { %v1725_v46 = vadd.f32 1e-12, %v1723_v58 }
0x1210   :  { %v1722_v60 = vpop.xlane.xlu0 %1721 }
0x1211   :  { %2649 = vrsqrt.f32 %v1725_v46  ;;  %v1724_v36 = vmul.f32 0.03125, %v1722_v60 }
0x1213   :  { %v1726_v61 = vadd.f32 1e-12, %v1724_v36 }
0x1215   :  { %2651 = vrsqrt.f32 %v1726_v61 }
0x121e   :  { %v2650_v37 = vpop.eup %2649 }
0x121f   :  { %v1729_v62 = vmul.f32 %v2650_v37, %v1713_v51 }
0x1221   :  { %v1735_v4 = vmul.f32 %v1734_v1, %v1729_v62 }
0x1222   :  { %v2652_v2 = vpop.eup %2651 }
0x1223   :  { %v1730_v3 = vmul.f32 %v2652_v2, %v1714_v54  ;;  %v1741_v7 = vadd.f32 %v1740_v5, %v1735_v4  ;;  %v2566_v2 = vld [vmem:[%s3296_s14] sm:$0xff]  }
0x1225   :  { %v1736_v6 = vmul.f32 %v1734_v1, %v1730_v3  ;;  %v2565_v1 = vld [vmem:[%s3296_s14 + $0x8] sm:$0xff]  }
0x1227   :  { %v1742_v8 = vadd.f32 %v1740_v5, %v1736_v6 }
0x1229   :  { %v1743_v9 = vpack.c.bf16 %v1742_v8, %v1741_v7 }
0x122b   :  { %2470 = vmatmul.mubr.msk.bf16.vlgmr.msra.gmra.mxu1 %vm67_vm0, %v1743_v9 }
0x122c   :  { %2489 = vmatprep.mubr.msk.bf16.mxu1 %vm2712_vm1, %v2711_v15  ;;  %2486 = vmatpush3.bf16.msra.mxu1 %v2565_v1 }
0x122d   :  { %2487 = vmatprep.subr.bf16.mxu1 %v2711_v15 }
0x1230   :  { %2488 = vmatpush3.bf16.msra.mxu1 %v2566_v2 }
0x1231   :  { %2493 = vmatprep.subr.bf16.mxu1 %v2711_v15 }
0x12eb   :  { %v1806_v16 = vpop.f32.mrf.mxu1 }
0x12ec   :  { %v1807_v17 = vadd.f32 %v2223_v14, %v1806_v16 }
0x12ed   :  { %v2471_v18 = vpop.f32.mrf.mxu1 }
0x12ee   :  { %v1815_v19 = vmul.f32 0.044715, %v1807_v17  ;;  %v1813_v35 = vmul.f32 0.5, %v1807_v17  ;;  %v1956_v18 = vrot.slane %v2242_v10, %v2855_v30  ;;  %v2568_v30 = vld [vmem:[%s3298_s16] sm:$0xff]  }
0x12ef   :  { %v1809_v20 = vpop.f32.mrf.mxu1 }
0x12f0   :  { %v1817_v21 = vmul.f32 %v1815_v19, %v1807_v17  ;;  %v1810_v22 = vadd.f32 %v2223_v14, %v1809_v20 }
0x12f1   :  { %v2472_v24 = vpop.f32.mrf.mxu1 }
0x12f2   :  { %v1819_v26 = vmul.f32 %v1817_v21, %v1807_v17  ;;  %v1816_v27 = vmul.f32 0.044715, %v1810_v22  ;;  %v1814_v48 = vmul.f32 0.5, %v1810_v22 }
0x12f4   :  { %v1821_v28 = vadd.f32 %v1819_v26, %v1807_v17  ;;  %v1818_v43 = vmul.f32 %v1816_v27, %v1810_v22  ;;  %v2243_v26 = vld [vmem:[%s3297_s15] ss:$0 sm:$0xff] }
0x12f6   :  { %v1823_v45 = vmul.f32 0.7978846, %v1821_v28  ;;  %v1820_v29 = vmul.f32 %v1818_v43, %v1810_v22 }
0x12f8   :  { %2653 = vtanh.f32 %v1823_v45  ;;  %v1822_v44 = vadd.f32 %v1820_v29, %v1810_v22 }
0x12fa   :  { %v1824_v31 = vmul.f32 0.7978846, %v1822_v44 }
0x12fc   :  { %2655 = vtanh.f32 %v1824_v31 }
0x1305   :  { %v2654_v32 = vpop.eup %2653 }
0x1306   :  { %v1827_v47 = vadd.f32 1.0, %v2654_v32 }
0x1308   :  { %v1829_v39 = vmul.f32 %v1827_v47, %v1813_v35 }
0x1309   :  { %v2656_v49 = vpop.eup %2655 }
0x130a   :  { %v1828_v38 = vadd.f32 1.0, %v2656_v49 }
0x130c   :  { %v1830_v59 = vmul.f32 %v1828_v38, %v1814_v48 }
0x130e   :  { %v1831_v40 = vpack.c.bf16 %v1830_v59, %v1829_v39  ;;  %v2115_v39 = vld [vmem:[%s3313_s9] sm:$0x3]  ;;  %v2721_v59 = vmov 0  }
0x130f   :  { %2544 = vset.pattern.permute.xlu0 %v2721_v59 }
0x1310   :  { %2482 = vmatmul.mubr.msk.bf16.vlgmr.msra.gmra.mxu0 %vm945_vm5, %v1831_v40 }
0x13d0   :  { %v1910_v50 = vpop.f32.mrf.mxu0 }
0x13d1   :  { %v1911_v51 = vadd.f32 %v2236_v41, %v1910_v50 }
0x13d2   :  { %v2483_v52 = vpop.f32.mrf.mxu0 }
0x13d3   :  { %v1919_v53 = vadd.f32 %v1911_v51, %v1741_v7 }
0x13d4   :  { %v1913_v0 = vpop.f32.mrf.mxu0 }
0x13d5   :  { %v1914_v54 = vadd.f32 %v2236_v41, %v1913_v0  ;;  %v1921_v33 = vsel %vm67_vm0, %v1919_v53, 0.0  ;;  %v2114_v0 = vand.u32 127, %v95_v23 }
0x13d6   :  { %1922 = vadd.xlane.f32.xlu1 %v1921_v33  ;;  %v2484_v55 = vpop.f32.mrf.mxu0 }
0x13d7   :  { %v1920_v56 = vadd.f32 %v1914_v54, %v1742_v8 }
0x13d9   :  { %v1924_v34 = vsel %vm67_vm0, %v1920_v56, 0.0 }
0x13da   :  { %1925 = vadd.xlane.f32.xlu0 %v1924_v34 }
0x145f   :  { %v1923_v42 = vpop.xlane.xlu1 %1922 }
0x1460   :  { %v1927_v57 = vmul.f32 0.03125, %v1923_v42 }
0x1462   :  { %v1929_v58 = vsub.f32 %v1919_v53, %v1927_v57 }
0x1463   :  { %v1926_v46 = vpop.xlane.xlu0 %1925 }
0x1464   :  { %v1928_v60 = vmul.f32 0.03125, %v1926_v46  ;;  %v1931_v36 = vmul.f32 %v1929_v58, %v1929_v58 }
0x1466   :  { %v1930_v61 = vsub.f32 %v1920_v56, %v1928_v60  ;;  %v1933_v63 = vsel %vm67_vm0, %v1931_v36, 0.0 }
0x1467   :  { %1934 = vadd.xlane.f32.xlu1 %v1933_v63 }
0x1468   :  { %v1932_v37 = vmul.f32 %v1930_v61, %v1930_v61 }
0x146a   :  { %v1936_v62 = vsel %vm67_vm0, %v1932_v37, 0.0 }
0x146b   :  { %1937 = vadd.xlane.f32.xlu0 %v1936_v62 }
0x14f0   :  { %v1935_v3 = vpop.xlane.xlu1 %1934 }
0x14f1   :  { %v1939_v4 = vmul.f32 0.03125, %v1935_v3 }
0x14f3   :  { %v1941_v5 = vadd.f32 1e-12, %v1939_v4 }
0x14f4   :  { %v1938_v6 = vpop.xlane.xlu0 %1937 }
0x14f5   :  { %2657 = vrsqrt.f32 %v1941_v5  ;;  %v1940_v7 = vmul.f32 0.03125, %v1938_v6 }
0x14f7   :  { %v1942_v8 = vadd.f32 1e-12, %v1940_v7 }
0x14f9   :  { %2659 = vrsqrt.f32 %v1942_v8 }
0x1502   :  { %v2658_v9 = vpop.eup %2657 }
0x1503   :  { %v1945_v12 = vmul.f32 %v2658_v9, %v1929_v58 }
0x1505   :  { %v1951_v16 = vmul.f32 %v1950_v11, %v1945_v12 }
0x1506   :  { %v2660_v13 = vpop.eup %2659 }
0x1507   :  { %v1946_v14 = vmul.f32 %v2660_v13, %v1930_v61  ;;  %v1957_v20 = vadd.f32 %v1956_v18, %v1951_v16 }
0x1509   :  { %v1952_v17 = vmul.f32 %v1950_v11, %v1946_v14 }
0x150b   :  { %v1958_v19 = vadd.f32 %v1956_v18, %v1952_v17 }
0x150d   :  { %v1960_v21 = vrot.slane %v1958_v19, 7 }
0x150f   :  { %v1963_v22 = vsel %vm1962_vm6, %v1957_v20, %v1960_v21 }
0x1510   :  { %v1964_v24 = vpack.c.bf16 %v1963_v22, %v1963_v22 }
0x1512   :  { %2490 = vmatmul.mubr.msk.bf16.vlgmr.msra.gmra.mxu1 %vm67_vm0, %v1964_v24 }
0x1513   :  { %2497 = vmatprep.mubr.msk.bf16.mxu1 %vm2712_vm1, %v2711_v15  ;;  %2494 = vmatpush3.bf16.msra.mxu1 %v2567_v25 }
0x1514   :  { %2495 = vmatprep.subr.bf16.mxu1 %v2711_v15  ;;  %v2247_v15 = vld [vmem:[%s3299_s17] ss:$0 sm:$0xff]  ;;  %s2722_s17 = smov [#allocation2]  }
0x1515   :  { %s2143_s8 = sshll.u32 %s2722_s17, 4  ;;  %s2144_s8 = int_to_ptr.vmem [resolvable:$true] %s2143_s8 }
0x1516   :  { %s2667_s27 = scalar_lea.vmem %s2144_s8, 32  ;;  %p2672_p1 = scmp.lt.s32.totalorder %s2144_s8, %s2144_s8 }
0x1517   :  { %2496 = vmatpush3.bf16.msra.mxu1 %v2568_v30  ;;  %p2668_p0 = scmp.ne.s32.totalorder %s2144_s8, %s2667_s27  ;;  %p2673_p2 = scmp.lt.s32.totalorder %s2667_s27, %s2667_s27 }
0x1519   :  { %p2674_p3 = por %p2673_p2, %p2672_p1 }
0x151b   :  { %p2675_p4 = pnand %p2674_p3, %p2668_p0 }
0x15d2   :  { %v2025_v27 = vpop.f32.mrf.mxu1 }
0x15d3   :  { %v2026_v28 = vadd.f32 %v2243_v26, %v2025_v27 }
0x15d4   :  { %v2491_v43 = vpop.f32.mrf.mxu1 }
0x15d5   :  { %2661 = vtanh.f32 %v2026_v28 }
0x15d6   :  { %v2028_v45 = vpop.f32.mrf.mxu1 }
0x15d8   :  { %v2492_v29 = vpop.f32.mrf.mxu1 }
0x15e2   :  { %v2662_v44 = vpop.eup %2661 }
0x15e3   :  { %v2032_v31 = vpack.c.bf16 %v2662_v44, %v2662_v44 }
0x15e5   :  { %2498 = vmatmul.mubr.msk.bf16.vlgmr.msra.gmra.mxu1 %vm67_vm0, %v2032_v31 }
0x16a5   :  { %v2093_v32 = vpop.f32.mrf.mxu1 }
0x16a6   :  { %v2094_v47 = vadd.f32 %v2247_v15, %v2093_v32 }
0x16a7   :  { %v2499_v49 = vpop.f32.mrf.mxu1 }
0x16a8   :  { %v2101_v35 = vsel %vm2099_vm7, %v2094_v47, -inf  ;;  %2100 = vst.msk [vmem:[#allocation2] sm:$0x3] %vm2099_vm7, %v2094_v47 }
0x16a9   :  { %2102 = vmax.xlane.f32.xlu0 %v2101_v35  ;;  %v2096_v48 = vpop.f32.mrf.mxu1 }
0x16ab   :  { %v2500_v38 = vpop.f32.mrf.mxu1 }
0x16bf   :  { %2117 = vperm.xlu0 %2544, %v2115_v39  }
0x1732   :  { %v2103_v40 = vpop.xlane.xlu0 %2102 }
0x1733   :  { %v2104_v41 = vsub.f32 %v2094_v47, %v2103_v40 }
0x1735   :  { %v2105_v50 = vmul.f32 1.442695, %v2104_v41 }
0x1737   :  { %2663 = vpow2.f32 %v2105_v50 }
0x173a   :  { %v2118_v54 = vpop.permute.xlu0 %2117 }
0x173b   :  { %vm2119_vm8 = vcmp.eq.s32.totalorder %v2114_v0, %v2118_v54 }
0x1744   :  { %v2664_v51 = vpop.eup %2663 }
0x1745   :  { %v2107_v52 = vsel %vm2099_vm7, %v2664_v51, 0.0 }
0x1746   :  { %2108 = vadd.xlane.f32.xlu1 %v2107_v52 }
0x17cf   :  { %v2109_v53 = vpop.xlane.xlu1 %2108 }
0x17d0   :  { %2665 = vlog2.f32 %v2109_v53 }
0x17dd   :  { %v2666_v33 = vpop.eup %2665 }
0x17de   :  { %v2111_v55 = vmul.f32 0.6931472, %v2666_v33 }
0x17e0   :  { %v2112_v56 = vsub.f32 %v2104_v41, %v2111_v55 }
0x17e2   :  { %v2120_v34 = vsel %vm2119_vm8, %v2112_v56, 0.0 }
0x17e3   :  { %v2121_v42 = vsel %vm2099_vm7, %v2120_v34, 0.0 }
0x17e4   :  { %2122 = vadd.xlane.f32.xlu1 %v2121_v42 }
0x17e5   :  { %2678 = shalt.err (!%p2675_p4)
}
0x17e6   :  { %2146 = dma.vmem_to_hbm [thread:$0]  %s2144_s8, 32, %s3300_s18, [#allocation3]   ;;  %vm2125_vm9 = vcmask 1041408   ;;  %vm2135_vm10 = vcmask 0  }
0x17e7   :  { %s2723_s23 = smov [#allocation4]  }
0x17e8   :  { %s2153_s4 = sshll.u32 %s2723_s23, 4  ;;  %s2154_s4 = int_to_ptr.vmem [resolvable:$true] %s2153_s4 }
0x17e9   :  { %s2687_s1 = scalar_lea.vmem %s2154_s4, 16  ;;  %s2691_s5 = scalar_lea.vmem %s2154_s4, 32 }
0x17ea   :  { %p2688_p5 = scmp.ne.s32.totalorder %s2154_s4, %s2687_s1  ;;  %p2692_p6 = scmp.lt.s32.totalorder %s2154_s4, %s2154_s4 }
0x17eb   :  { %p2693_p7 = scmp.lt.s32.totalorder %s2691_s5, %s2687_s1 }
0x17ed   :  { %p2694_p8 = por %p2693_p7, %p2692_p6 }
0x17ef   :  { %p2695_p9 = pnand %p2694_p8, %p2688_p5 }
0x186d   :  { %v2123_v23 = vpop.xlane.xlu1 %2122 }
0x186e   :  { %v2124_v57 = vsub.f32 0.0, %v2123_v23 }
0x1870   :  { %v2126_v58 = vsel %vm2125_vm9, %v2124_v57, 0.0 }
0x1871   :  { %v2127_v46 = vrot.slane %v2126_v58, 4 }
0x1873   :  { %v2128_v60 = vadd.f32 %v2127_v46, %v2126_v58 }
0x1875   :  { %v2129_v36 = vrot.slane %v2128_v60, 2 }
0x1877   :  { %v2130_v61 = vadd.f32 %v2129_v36, %v2128_v60 }
0x1879   :  { %v2131_v63 = vrot.slane %v2130_v61, 1 }
0x187b   :  { %v2132_v37 = vadd.f32 %v2131_v63, %v2130_v61 }
0x187d   :  { %v2134_v62 = vmul.f32 0.5, %v2132_v37 }
0x187f   :  { %2136 = vst.msk [vmem:[#allocation4] sm:$0x1] %vm2135_vm10, %v2134_v62 }
0x1880   :  { %2698 = shalt.err (!%p2695_p9)
}
0x1881   :  { %2156 = dma.vmem_to_hbm [thread:$0]  %s2154_s4, 16, %s3301_s19, [#allocation5]  }
0x1882   :  { %2707 = dma.done.wait [#allocation3], 32  }
0x1883   :  { %2708 = vsyncadd [#allocation3], 4294967264 }
0x1884   :  { %2709 = dma.done.wait [#allocation5], 16  }
0x1885   :  { %2710 = vsyncadd [#allocation5], 4294967280 }
0x1886   :  { %2163 = vsyncpa [#allocation3], 1 }
0x1887   :  { %2164 = vsyncpa [#allocation5], 1 }

</bundles_post_ra>
